<compile_context>
chip_gen: v7x
topology: tpu7x:2x2x1
jax: 0.10.0
libtpu: 0.0.40
codegen_flags: <defaults>
</compile_context>

<pallas_src>
import numpy as np
import jax
import jax.numpy as jnp
from jax.experimental import pallas as pl
from jax.experimental.pallas import tpu as pltpu

_CP = 32       # channel padding (lanes per spatial column) for inter-layer activations
_NB_MAX = 64   # max images per grid step (multiple of 16); ~6 MiB VMEM at 16x16 inputs


def _round_up(x, m):
    return (x + m - 1) // m * m


def _banded_weights(w_oihw, in_cols, in_stride, out_cols, cp_out):
    """Banded conv-as-matmul weights (fused over the kernel-row taps).

    Returns B of shape (K * in_cols * Cin, out_cols * cp_out) with
        B[(kh*in_cols + wd)*Cin + ci, wo*cp_out + co] = w[co, ci, kh, wd//in_stride - wo]
    whenever wd % in_stride == 0 and 0 <= wd//in_stride - wo < K, else 0.

    in_stride=1: plain valid conv over a channel-interleaved row x[(w*Cin + ci)].
    in_stride=2: input columns are in the "dilated pooled" layout (block wd holds
    max(col wd, col wd+1)); only even wd carry data, odd blocks get zero weights, so
    the pool compaction is performed by the matmul itself.
    """
    cout, cin, k, _ = w_oihw.shape
    wd = np.arange(in_cols)[:, None]                      # (in_cols, 1)
    wo = np.arange(out_cols)[None, :]                     # (1, out_cols)
    kw = wd // in_stride - wo                             # (in_cols, out_cols)
    valid = (wd % in_stride == 0) & (kw >= 0) & (kw < k)
    kw_safe = np.clip(kw, 0, k - 1)

    w_t = jnp.transpose(w_oihw, (2, 3, 1, 0))             # (kh, kw, ci, co)
    g = w_t[:, kw_safe, :, :]                             # (kh, in_cols, out_cols, ci, co)
    g = jnp.where(jnp.asarray(valid)[None, :, :, None, None], g, 0.0)
    g = jnp.transpose(g, (0, 1, 3, 2, 4))                 # (kh, in_cols, ci, out_cols, co)
    g = jnp.pad(g, ((0, 0), (0, 0), (0, 0), (0, 0), (0, cp_out - cout)))
    return g.reshape(k * in_cols * cin, out_cols * cp_out)


def lenet_forward(x_nchw, w1_oihw, w2_oihw, *, nb_max=_NB_MAX):
    """Matches LeNet.forward: relu(conv1) -> pool(2) -> relu(conv2) -> pool(2) -> flatten."""
    N, Cin, H, W = x_nchw.shape
    C1, _, K, _ = w1_oihw.shape
    C2 = w2_oihw.shape[0]
    H1, W1 = H - K + 1, W - K + 1          # conv1 output
    H1p, W1p = H1 // 2, W1 // 2            # pool1 output
    H2, W2 = H1p - K + 1, W1p - K + 1      # conv2 output
    H2p, W2p = H2 // 2, W2 // 2            # pool2 output (final feature map)
    CP = _CP
    Wd1 = W1 - 1                           # dilated pool1 width kept between layers
    Wd2 = W2 - 1                           # dilated pool2 width written out
    assert min(H1, W1, H2, W2, H2p, W2p, Wd1, Wd2) >= 1, "input too small for LeNet trunk"
    assert C1 <= CP and C2 <= CP

    # Batch tile: multiple of 16 so the bf16 (NB, lanes) slabs are sublane-tile exact
    # and the stacked-M reshapes are pure relabelings.
    NB = max(16, min(_round_up(nb_max, 16), _round_up(N, 16)))
    N_pad = _round_up(N, NB)
    n_steps = N_pad // NB

    # ---- host-side prep: layout + banded bf16 weights (no im2col of activations) ----
    # x as (H, N_pad, W*Cin): height leading, batch on sublanes, (w, ci) interleaved lanes.
    x_p = jnp.transpose(x_nchw, (2, 0, 3, 1)).reshape(H, N, W * Cin)
    x_p = jnp.pad(x_p, ((0, 0), (0, N_pad - N), (0, 0))).astype(jnp.bfloat16)

    b1 = _banded_weights(w1_oihw, W, 1, W1, CP).astype(jnp.bfloat16)      # (K*W*Cin,   W1*CP)
    w2_pad = jnp.pad(w2_oihw, ((0, 0), (0, CP - C1), (0, 0), (0, 0)))     # Cin 6 -> CP (zeros)
    b2 = _banded_weights(w2_pad, Wd1, 2, W2, CP).astype(jnp.bfloat16)     # (K*Wd1*CP, W2*CP)

    def kernel(x_ref, b1_ref, b2_ref, o_ref):
        x = x_ref[...]                                                   # (H, NB, W*Cin) bf16

        # ---- conv1 + ReLU: ONE fused-K MXU matmul, M = H1*NB stacked rows ----
        lhs1 = jnp.concatenate([x[kh:kh + H1] for kh in range(K)], axis=-1)   # (H1, NB, K*W*Cin)
        lhs1 = lhs1.reshape(H1 * NB, K * W * Cin)                             # tile-exact relabel
        a1 = jnp.dot(lhs1, b1_ref[...], preferred_element_type=jnp.float32)
        a1 = jnp.maximum(a1, 0.0)                                             # (H1*NB, W1*CP)

        # ---- pool1: rows = pair max via tile-exact reshape; cols = dilated pair max ----
        a1 = a1[: 2 * H1p * NB].reshape(H1p, 2, NB, W1 * CP)
        r1 = jnp.maximum(a1[:, 0], a1[:, 1])                                  # (H1p, NB, W1*CP)
        # dilated: block w <- max(col w, col w+1); compaction is baked into b2's band.
        p1 = jnp.maximum(r1[..., : Wd1 * CP], r1[..., CP:]).astype(jnp.bfloat16)  # (H1p, NB, Wd1*CP)

        # ---- conv2 + ReLU: ONE fused-K matmul, M = H2*NB ----
        lhs2 = jnp.concatenate([p1[kh:kh + H2] for kh in range(K)], axis=-1)  # (H2, NB, K*Wd1*CP)
        lhs2 = lhs2.reshape(H2 * NB, K * Wd1 * CP)
        a2 = jnp.dot(lhs2, b2_ref[...], preferred_element_type=jnp.float32)
        a2 = jnp.maximum(a2, 0.0)                                             # (H2*NB, W2*CP)

        # ---- pool2 (rows pair max, cols dilated; host selects even blocks + real chans) ----
        a2 = a2[: 2 * H2p * NB].reshape(H2p, 2, NB, W2 * CP)
        r2 = jnp.maximum(a2[:, 0], a2[:, 1])                                  # (H2p, NB, W2*CP)
        p2 = jnp.maximum(r2[..., : Wd2 * CP], r2[..., CP:])                   # (H2p, NB, Wd2*CP)

        o_ref[...] = p2.astype(o_ref.dtype)

    out = pl.pallas_call(
        kernel,
        out_shape=jax.ShapeDtypeStruct((H2p, N_pad, Wd2 * CP), jnp.float32),
        grid=(n_steps,),
        in_specs=[
            pl.BlockSpec((H, NB, W * Cin), lambda n: (0, n, 0)),       # batched input block
            pl.BlockSpec((K * W * Cin, W1 * CP), lambda n: (0, 0)),    # conv1 banded weights
            pl.BlockSpec((K * Wd1 * CP, W2 * CP), lambda n: (0, 0)),   # conv2 banded weights
        ],
        out_specs=pl.BlockSpec((H2p, NB, Wd2 * CP), lambda n: (0, n, 0)),
        compiler_params=pltpu.CompilerParams(
            dimension_semantics=("parallel",),       # batch blocks are independent
            vmem_limit_bytes=32 * 1024 * 1024,       # ~6 MiB used at NB=64; safe v5e..v7x
        ),
    )(x_p, b1, b2)

    # Output formatting only (tiny tensor): drop batch padding, pick the pooled (even)
    # dilated column blocks and the real channels, then reorder to torch's x.view(N,-1)
    # (NCHW) flatten order.
    out = out[:, :N, :].reshape(H2p, N, Wd2, CP)
    feat = out[:, :, 0::2, :C2]                      # (H2p, N, W2p, C2)
    feat = jnp.transpose(feat, (1, 3, 0, 2))         # (N, C2, H2p, W2p)
    return feat.reshape(N, -1)


# ---------------------------------------------------------------------------
# Pure-JAX reference (for correctness check)
# ---------------------------------------------------------------------------
def lenet_reference(x_nchw, w1, w2):
    dn = ('NCHW', 'OIHW', 'NCHW')
    y = jax.lax.conv_general_dilated(x_nchw, w1, (1, 1), 'VALID', dimension_numbers=dn)
    y = jnp.maximum(y, 0.0)
    y = jax.lax.reduce_window(y, -jnp.inf, jax.lax.max, (1, 1, 2, 2), (1, 1, 2, 2), 'VALID')
    y = jax.lax.conv_general_dilated(y, w2, (1, 1), 'VALID', dimension_numbers=dn)
    y = jnp.maximum(y, 0.0)
    y = jax.lax.reduce_window(y, -jnp.inf, jax.lax.max, (1, 1, 2, 2), (1, 1, 2, 2), 'VALID')
    return y.reshape(y.shape[0], -1)


if __name__ == "__main__":
    key = jax.random.PRNGKey(0)
    k_x, k_w1, k_w2 = jax.random.split(key, 3)

    # LeNet-consistent small shapes: 16x16 -> 12 -> 6 -> 2 -> 1, flat dim = 16*1*1
    N, Cin, H, W = 2, 4, 16, 16
    x = jax.random.normal(k_x, (N, Cin, H, W), dtype=jnp.float32)
    # Conv2d(..., bias=False) weight shapes from LeNet.__init__
    w1 = 0.1 * jax.random.normal(k_w1, (6, Cin, 5, 5), dtype=jnp.float32)
    w2 = 0.1 * jax.random.normal(k_w2, (16, 6, 5, 5), dtype=jnp.float32)

    out = jax.jit(lenet_forward)(x, w1, w2)
    out = jax.block_until_ready(out)

    ref = lenet_reference(x, w1, w2)
    assert out.shape == ref.shape == (N, 16), (out.shape, ref.shape)
    # bf16 MXU operands with f32 accumulation -> expected abs error ~1e-2 scale.
    assert jnp.allclose(out, ref, rtol=2e-2, atol=2e-2), "Pallas LeNet mismatch vs reference"

    print("KERNEL_OK")
</pallas_src>

<mosaic_0001>
module attributes {stable_mosaic.version = 11 : i64} {
  func.func @kernel(%arg0: i32, %arg1: memref<16x16x64xbf16, #tpu.memory_space<vmem>>, %arg2: memref<320x384xbf16, #tpu.memory_space<vmem>>, %arg3: memref<1760x64xbf16, #tpu.memory_space<vmem>>, %arg4: memref<1x16x32xf32, #tpu.memory_space<vmem>>) attributes {dimension_semantics = [#tpu.dimension_semantics<parallel>], iteration_bounds = array<i64: 1>, scalar_prefetch = 0 : i64, scratch_operands = 0 : i64, tpu.core_type = #tpu.core_type<tc>, window_params = [{transform_indices = @transform_0, window_bounds = array<i64: 16, 16, 64>}, {pipeline_mode = #tpu.pipeline_mode<synchronous>, transform_indices = @transform_1, window_bounds = array<i64: 320, 384>}, {pipeline_mode = #tpu.pipeline_mode<synchronous>, transform_indices = @transform_2, window_bounds = array<i64: 1760, 64>}, {transform_indices = @transform_3, window_bounds = array<i64: 1, 16, 32>}]} {
    %c0 = arith.constant 0 : index
    %c0_0 = arith.constant 0 : index
    %c0_1 = arith.constant 0 : index
    %0 = vector.load %arg1[%c0, %c0_0, %c0_1] : memref<16x16x64xbf16, #tpu.memory_space<vmem>>, vector<16x16x64xbf16>
    %1 = vector.extract_strided_slice %0 {offsets = [0, 0, 0], sizes = [12, 16, 64], strides = [1, 1, 1]} : vector<16x16x64xbf16> to vector<12x16x64xbf16>
    %2 = vector.extract_strided_slice %0 {offsets = [1, 0, 0], sizes = [12, 16, 64], strides = [1, 1, 1]} : vector<16x16x64xbf16> to vector<12x16x64xbf16>
    %3 = vector.extract_strided_slice %0 {offsets = [2, 0, 0], sizes = [12, 16, 64], strides = [1, 1, 1]} : vector<16x16x64xbf16> to vector<12x16x64xbf16>
    %4 = vector.extract_strided_slice %0 {offsets = [3, 0, 0], sizes = [12, 16, 64], strides = [1, 1, 1]} : vector<16x16x64xbf16> to vector<12x16x64xbf16>
    %5 = vector.extract_strided_slice %0 {offsets = [4, 0, 0], sizes = [12, 16, 64], strides = [1, 1, 1]} : vector<16x16x64xbf16> to vector<12x16x64xbf16>
    %6 = tpu.concatenate %1, %2, %3, %4, %5 in 2 : vector<12x16x64xbf16>, vector<12x16x64xbf16>, vector<12x16x64xbf16>, vector<12x16x64xbf16>, vector<12x16x64xbf16> -> vector<12x16x320xbf16>
    %7 = vector.shape_cast %6 : vector<12x16x320xbf16> to vector<192x320xbf16>
    %c0_2 = arith.constant 0 : index
    %c0_3 = arith.constant 0 : index
    %8 = vector.load %arg2[%c0_2, %c0_3] : memref<320x384xbf16, #tpu.memory_space<vmem>>, vector<320x384xbf16>
    %cst = arith.constant dense<0.000000e+00> : vector<192x384xf32>
    %9 = tpu.matmul %7, %8, %cst {dimension_numbers = #tpu.dot_dimension_numbers<[1], [0], [0], [1], [0, 0, 1, 1], [], []>} : vector<192x320xbf16>, vector<320x384xbf16>, vector<192x384xf32> -> vector<192x384xf32>
    %cst_4 = arith.constant 0.000000e+00 : f32
    %10 = vector.broadcast %cst_4 : f32 to vector<192x384xf32>
    %11 = arith.maximumf %9, %10 : vector<192x384xf32>
    %12 = vector.shape_cast %11 : vector<192x384xf32> to vector<6x2x16x384xf32>
    %13 = vector.extract_strided_slice %12 {offsets = [0, 0, 0, 0], sizes = [6, 1, 16, 384], strides = [1, 1, 1, 1]} : vector<6x2x16x384xf32> to vector<6x1x16x384xf32>
    %14 = vector.shape_cast %13 : vector<6x1x16x384xf32> to vector<6x16x384xf32>
    %15 = vector.extract_strided_slice %12 {offsets = [0, 1, 0, 0], sizes = [6, 1, 16, 384], strides = [1, 1, 1, 1]} : vector<6x2x16x384xf32> to vector<6x1x16x384xf32>
    %16 = vector.shape_cast %15 : vector<6x1x16x384xf32> to vector<6x16x384xf32>
    %17 = arith.maximumf %14, %16 : vector<6x16x384xf32>
    %18 = vector.extract_strided_slice %17 {offsets = [0, 0, 0], sizes = [6, 16, 352], strides = [1, 1, 1]} : vector<6x16x384xf32> to vector<6x16x352xf32>
    %19 = vector.extract_strided_slice %17 {offsets = [0, 0, 32], sizes = [6, 16, 352], strides = [1, 1, 1]} : vector<6x16x384xf32> to vector<6x16x352xf32>
    %20 = arith.maximumf %18, %19 : vector<6x16x352xf32>
    %21 = arith.truncf %20 : vector<6x16x352xf32> to vector<6x16x352xbf16>
    %22 = vector.extract_strided_slice %21 {offsets = [0, 0, 0], sizes = [2, 16, 352], strides = [1, 1, 1]} : vector<6x16x352xbf16> to vector<2x16x352xbf16>
    %23 = vector.extract_strided_slice %21 {offsets = [1, 0, 0], sizes = [2, 16, 352], strides = [1, 1, 1]} : vector<6x16x352xbf16> to vector<2x16x352xbf16>
    %24 = vector.extract_strided_slice %21 {offsets = [2, 0, 0], sizes = [2, 16, 352], strides = [1, 1, 1]} : vector<6x16x352xbf16> to vector<2x16x352xbf16>
    %25 = vector.extract_strided_slice %21 {offsets = [3, 0, 0], sizes = [2, 16, 352], strides = [1, 1, 1]} : vector<6x16x352xbf16> to vector<2x16x352xbf16>
    %26 = vector.extract_strided_slice %21 {offsets = [4, 0, 0], sizes = [2, 16, 352], strides = [1, 1, 1]} : vector<6x16x352xbf16> to vector<2x16x352xbf16>
    %27 = tpu.concatenate %22, %23, %24, %25, %26 in 2 : vector<2x16x352xbf16>, vector<2x16x352xbf16>, vector<2x16x352xbf16>, vector<2x16x352xbf16>, vector<2x16x352xbf16> -> vector<2x16x1760xbf16>
    %28 = vector.shape_cast %27 : vector<2x16x1760xbf16> to vector<32x1760xbf16>
    %c0_5 = arith.constant 0 : index
    %c0_6 = arith.constant 0 : index
    %29 = vector.load %arg3[%c0_5, %c0_6] : memref<1760x64xbf16, #tpu.memory_space<vmem>>, vector<1760x64xbf16>
    %cst_7 = arith.constant dense<0.000000e+00> : vector<32x64xf32>
    %30 = tpu.matmul %28, %29, %cst_7 {dimension_numbers = #tpu.dot_dimension_numbers<[1], [0], [0], [1], [0, 0, 1, 1], [], []>} : vector<32x1760xbf16>, vector<1760x64xbf16>, vector<32x64xf32> -> vector<32x64xf32>
    %cst_8 = arith.constant 0.000000e+00 : f32
    %31 = vector.broadcast %cst_8 : f32 to vector<32x64xf32>
    %32 = arith.maximumf %30, %31 : vector<32x64xf32>
    %33 = vector.shape_cast %32 : vector<32x64xf32> to vector<1x2x16x64xf32>
    %34 = vector.extract_strided_slice %33 {offsets = [0, 0, 0, 0], sizes = [1, 1, 16, 64], strides = [1, 1, 1, 1]} : vector<1x2x16x64xf32> to vector<1x1x16x64xf32>
    %35 = vector.shape_cast %34 : vector<1x1x16x64xf32> to vector<1x16x64xf32>
    %36 = vector.extract_strided_slice %33 {offsets = [0, 1, 0, 0], sizes = [1, 1, 16, 64], strides = [1, 1, 1, 1]} : vector<1x2x16x64xf32> to vector<1x1x16x64xf32>
    %37 = vector.shape_cast %36 : vector<1x1x16x64xf32> to vector<1x16x64xf32>
    %38 = arith.maximumf %35, %37 : vector<1x16x64xf32>
    %39 = vector.extract_strided_slice %38 {offsets = [0, 0, 0], sizes = [1, 16, 32], strides = [1, 1, 1]} : vector<1x16x64xf32> to vector<1x16x32xf32>
    %40 = vector.extract_strided_slice %38 {offsets = [0, 0, 32], sizes = [1, 16, 32], strides = [1, 1, 1]} : vector<1x16x64xf32> to vector<1x16x32xf32>
    %41 = arith.maximumf %39, %40 : vector<1x16x32xf32>
    %c0_9 = arith.constant 0 : index
    %c0_10 = arith.constant 0 : index
    %c0_11 = arith.constant 0 : index
    %42 = vector.load %arg4[%c0_9, %c0_10, %c0_11] : memref<1x16x32xf32, #tpu.memory_space<vmem>>, vector<1x16x32xf32>
    tpu.vector_store %arg4[%c0_9, %c0_10, %c0_11], %41 {strides = array<i32>} : memref<1x16x32xf32, #tpu.memory_space<vmem>>, vector<1x16x32xf32>,
    return
  }
  func.func @transform_0(%arg0: i32) -> (i32, i32, i32) {
    %c0_i32 = arith.constant 0 : i32
    %c0_i32_0 = arith.constant 0 : i32
    %c0_i32_1 = arith.constant 0 : i32
    return %c0_i32, %arg0, %c0_i32_0 : i32, i32, i32
  }
  func.func @transform_1(%arg0: i32) -> (i32, i32) {
    %c0_i32 = arith.constant 0 : i32
    %c0_i32_0 = arith.constant 0 : i32
    %c0_i32_1 = arith.constant 0 : i32
    return %c0_i32, %c0_i32_0 : i32, i32
  }
  func.func @transform_2(%arg0: i32) -> (i32, i32) {
    %c0_i32 = arith.constant 0 : i32
    %c0_i32_0 = arith.constant 0 : i32
    %c0_i32_1 = arith.constant 0 : i32
    return %c0_i32, %c0_i32_0 : i32, i32
  }
  func.func @transform_3(%arg0: i32) -> (i32, i32, i32) {
    %c0_i32 = arith.constant 0 : i32
    %c0_i32_0 = arith.constant 0 : i32
    %c0_i32_1 = arith.constant 0 : i32
    return %c0_i32, %arg0, %c0_i32_0 : i32, i32, i32
  }
}

</mosaic_0001>

<bundles_post_ra>
// kernel: lenet_forward.1
= control target key start
LH: loop header
LB: loop body
LE: loop exit
PB: predicated region body
PF: predicated region fallthrough
CT: control target
= control target key end

     0   :  { %s3756_s16 = smov 64   ;;  %vm155_vm0 = vcmask 523264   ;;  %s3758_s19 = smov 96   ;;  %vm1418_vm1 = vcmask 785408   ;;  %vm1599_vm2 = vcmask 261120   ;;  %s4906_s0 = inlined_call_operand.vmem [shape: bf16[16,16,64], index: 0, kind: input, shape index: {}]   ;;  %s4907_s1 = inlined_call_operand.vmem [shape: bf16[320,384], index: 1, kind: input, shape index: {}]   ;;  %s4908_s2 = inlined_call_operand.vmem [shape: bf16[1760,64], index: 2, kind: input, shape index: {}]   ;;  %s4909_s3 = inlined_call_operand.vmem [shape: f32[1,16,32], index: 3, kind: output, shape index: {}]  }
   0x1   :  { %v3783_v0 = vld [vmem:[%s4906_s0 + $0x18] sm:$0xff]   ;;  %v3788_v1 = vld [vmem:[%s4906_s0 + $0x8] sm:$0xff]   ;;  %v3795_v2 = vld [vmem:[%s4906_s0 + $0x20] sm:$0xff]   ;;  %s3759_s4 = smov 32  }
   0x2   :  { %116 = vrot.lane.b32.xlu0 %v3783_v0, %s3756_s16  ;;  %118 = vrot.lane.b32.xlu1 %v3795_v2, %s3756_s16  ;;  %v3802_v3 = vld [vmem:[%s4906_s0 + $0x10] sm:$0xff]   ;;  %v3809_v4 = vld [vmem:[%s4906_s0 + $0x28] sm:$0xff]  }
   0x3   :  { %v3814_v5 = vld [vmem:[%s4906_s0 + $0x30] sm:$0xff]   ;;  %v3821_v6 = vld [vmem:[%s4906_s0 + $0x38] sm:$0xff]   ;;  %v3561_v8 = vld [vmem:[%s4907_s1] ss:$12 sps:$4 sm:$0xff]  }
   0x4   :  { %v3559_v7 = vld [vmem:[%s4907_s1 + $0x4] ss:$12 sps:$4 sm:$0xff]   ;;  %v3562_v9 = vld [vmem:[%s4907_s1 + $0x1c] ss:$12 sps:$4 sm:$0xff]   ;;  %v3566_v12 = vld [vmem:[%s4907_s1 + $0x34] ss:$12 sps:$4 sm:$0xff]  }
   0x5   :  { %638 = vmatprep.subr.bf16.mxu0 %v3559_v7  ;;  %v3839_v10 = vld [vmem:[%s4906_s0 + $0x40] sm:$0xff]   ;;  %v3852_v13 = vld [vmem:[%s4906_s0 + $0x48] sm:$0xff]   ;;  %v3857_v14 = vld [vmem:[%s4906_s0 + $0x50] sm:$0xff]  }
   0x6   :  { %112 = vrot.lane.b32.xlu0 %v3788_v1, %s3756_s16  ;;  %114 = vrot.lane.b32.xlu1 %v3802_v3, %s3756_s16  ;;  %v3565_v11 = vld [vmem:[%s4907_s1 + $0x18] ss:$12 sps:$4 sm:$0xff]   ;;  %v3568_v15 = vld [vmem:[%s4907_s1 + $0x30] ss:$12 sps:$4 sm:$0xff]  }
   0x7   :  { %639 = vmatpush1.bf16.msra.mxu0 %v3561_v8  ;;  %v3569_v16 = vld [vmem:[%s4907_s1 + $0x4c] ss:$12 sps:$4 sm:$0xff]   ;;  %v3572_v18 = vld [vmem:[%s4907_s1 + $0x48] ss:$12 sps:$4 sm:$0xff]   ;;  %v3882_v19 = vld [vmem:[%s4906_s0 + $0x60] sm:$0xff]  }
   0x8   :  { %640 = vmatprep.subr.bf16.mxu0 %v3562_v9  ;;  %v3872_v17 = vld [vmem:[%s4906_s0 + $0x58] sm:$0xff]   ;;  %v3573_v20 = vld [vmem:[%s4907_s1 + $0x64] ss:$12 sps:$4 sm:$0xff]   ;;  %v3892_v21 = vld [vmem:[%s4906_s0 + $0x68] sm:$0xff]  }
   0x9   :  { %v3575_v22 = vld [vmem:[%s4907_s1 + $0x60] ss:$12 sps:$4 sm:$0xff]   ;;  %v3576_v23 = vld [vmem:[%s4907_s1 + $0x7c] ss:$12 sps:$4 sm:$0xff]   ;;  %v3579_v26 = vld [vmem:[%s4907_s1 + $0x78] ss:$12 sps:$4 sm:$0xff]  }
   0xa   :  { %120 = vrot.lane.b32.xlu0 %v3809_v4, %s3756_s16  ;;  %122 = vrot.lane.b32.xlu1 %v3814_v5, %s3756_s16  ;;  %v3590_v24 = vld [vmem:[%s4907_s1 + $0xc8] ss:$12 sps:$4 sm:$0xff]   ;;  %v3596_v29 = vld [vmem:[%s4907_s1 + $0xe0] ss:$12 sps:$4 sm:$0xff]  }
   0xb   :  { %641 = vmatpush1.bf16.msra.mxu0 %v3565_v11  ;;  %v3591_v25 = vld [vmem:[%s4907_s1 + $0x8] ss:$12 sps:$4 sm:$0xff]   ;;  %3096 = vmatprep.subr.bf16.mxu1 %v3590_v24  ;;  %v3597_v30 = vld [vmem:[%s4907_s1 + $0x20] ss:$12 sps:$4 sm:$0xff]   ;;  %v3582_v31 = vld [vmem:[%s4907_s1 + $0x90] ss:$12 sps:$4 sm:$0xff]  }
   0xc   :  { %642 = vmatprep.subr.bf16.mxu0 %v3566_v12  ;;  %3097 = vmatpush3.bf16.msra.mxu1 %v3591_v25  ;;  %v3916_v27 = vld [vmem:[%s4906_s0 + $0x70] sm:$0xff]   ;;  %v3583_v32 = vld [vmem:[%s4907_s1 + $0xac] ss:$12 sps:$4 sm:$0xff]   ;;  %v3592_v40 = vld [vmem:[%s4907_s1 + $0xdc] ss:$12 sps:$4 sm:$0xff]  }
   0xd   :  { %v3580_v28 = vld [vmem:[%s4907_s1 + $0x94] ss:$12 sps:$4 sm:$0xff]   ;;  %3098 = vmatprep.subr.bf16.mxu1 %v3596_v29  ;;  %v3601_v33 = vld [vmem:[%s4907_s1 + $0xf8] ss:$12 sps:$4 sm:$0xff]   ;;  %v3606_v37 = vld [vmem:[%s4907_s1 + $0x110] ss:$12 sps:$4 sm:$0xff]  }
   0xe   :  { %124 = vrot.lane.b32.xlu0 %v3821_v6, %s3756_s16  ;;  %126 = vrot.lane.b32.xlu1 %v3839_v10, %s3756_s16  ;;  %v3602_v34 = vld [vmem:[%s4907_s1 + $0x38] ss:$12 sps:$4 sm:$0xff]   ;;  %v3586_v35 = vld [vmem:[%s4907_s1 + $0xa8] ss:$12 sps:$4 sm:$0xff]  }
   0xf   :  { %643 = vmatpush1.bf16.msra.mxu0 %v3568_v15  ;;  %v3587_v36 = vld [vmem:[%s4907_s1 + $0xc4] ss:$12 sps:$4 sm:$0xff]   ;;  %v3589_v39 = vld [vmem:[%s4907_s1 + $0xc0] ss:$12 sps:$4 sm:$0xff]   ;;  %v3611_v41 = vld [vmem:[%s4907_s1 + $0x128] ss:$12 sps:$4 sm:$0xff]  }
  0x10   :  { %644 = vmatprep.subr.bf16.mxu0 %v3569_v16  ;;  %3099 = vmatpush3.bf16.msra.mxu1 %v3597_v30  ;;  %v3607_v38 = vld [vmem:[%s4907_s1 + $0x50] ss:$12 sps:$4 sm:$0xff]   ;;  %v3612_v42 = vld [vmem:[%s4907_s1 + $0x68] ss:$12 sps:$4 sm:$0xff]   ;;  %v3616_v43 = vld [vmem:[%s4907_s1 + $0x140] ss:$12 sps:$4 sm:$0xff]  }
  0x11   :  { %3100 = vmatprep.subr.bf16.mxu1 %v3601_v33  ;;  %v3595_v44 = vld [vmem:[%s4907_s1 + $0xd8] ss:$12 sps:$4 sm:$0xff]   ;;  %v3598_v45 = vld [vmem:[%s4907_s1 + $0xf4] ss:$12 sps:$4 sm:$0xff]   ;;  %v3600_v48 = vld [vmem:[%s4907_s1 + $0xf0] ss:$12 sps:$4 sm:$0xff]  }
  0x12   :  { %128 = vrot.lane.b32.xlu0 %v3852_v13, %s3756_s16  ;;  %130 = vrot.lane.b32.xlu1 %v3857_v14, %s3756_s16  ;;  %v3617_v46 = vld [vmem:[%s4907_s1 + $0x80] ss:$12 sps:$4 sm:$0xff]   ;;  %v3621_v47 = vld [vmem:[%s4907_s1 + $0x158] ss:$12 sps:$4 sm:$0xff]  }
  0x13   :  { %645 = vmatpush1.bf16.msra.mxu0 %v3572_v18  ;;  %v3603_v49 = vld [vmem:[%s4907_s1 + $0x10c] ss:$12 sps:$4 sm:$0xff]   ;;  %v3626_v51 = vld [vmem:[%s4907_s1 + $0x170] ss:$12 sps:$4 sm:$0xff]   ;;  %v3605_v52 = vld [vmem:[%s4907_s1 + $0x108] ss:$12 sps:$4 sm:$0xff]  }
  0x14   :  { %646 = vmatprep.subr.bf16.mxu0 %v3573_v20  ;;  %3101 = vmatpush3.bf16.msra.mxu1 %v3602_v34  ;;  %v3622_v50 = vld [vmem:[%s4907_s1 + $0x98] ss:$12 sps:$4 sm:$0xff]   ;;  %v3627_v54 = vld [vmem:[%s4907_s1 + $0xb0] ss:$12 sps:$4 sm:$0xff]   ;;  %v3610_v55 = vld [vmem:[%s4907_s1 + $0x120] ss:$12 sps:$4 sm:$0xff]  }
  0x15   :  { %3102 = vmatprep.subr.bf16.mxu1 %v3606_v37  ;;  %v3608_v53 = vld [vmem:[%s4907_s1 + $0x124] ss:$12 sps:$4 sm:$0xff]   ;;  %v3613_v56 = vld [vmem:[%s4907_s1 + $0x13c] ss:$12 sps:$4 sm:$0xff]   ;;  %v3618_v58 = vld [vmem:[%s4907_s1 + $0x154] ss:$12 sps:$4 sm:$0xff]  }
  0x16   :  { %132 = vrot.lane.b32.xlu0 %v3872_v17, %s3756_s16  ;;  %134 = vrot.lane.b32.xlu1 %v3882_v19, %s3756_s16  ;;  %v3615_v57 = vld [vmem:[%s4907_s1 + $0x138] ss:$12 sps:$4 sm:$0xff]   ;;  %v3620_v59 = vld [vmem:[%s4907_s1 + $0x150] ss:$12 sps:$4 sm:$0xff]  }
  0x17   :  { %647 = vmatpush1.bf16.msra.mxu0 %v3575_v22  ;;  %v3623_v60 = vld [vmem:[%s4907_s1 + $0x16c] ss:$12 sps:$4 sm:$0xff]   ;;  %v3625_v61 = vld [vmem:[%s4907_s1 + $0x168] ss:$12 sps:$4 sm:$0xff]   ;;  %v3630_v62 = vld [vmem:[%s4907_s1 + $0x184] ss:$12 sps:$4 sm:$0xff]  }
  0x18   :  { %648 = vmatprep.subr.bf16.mxu0 %v3576_v23  ;;  %3103 = vmatpush3.bf16.msra.mxu1 %v3607_v38  ;;  %v4028_v63 = vld [vmem:[%s4907_s1 + $0x188] ss:$12 sps:$4 sm:$0xff]   ;;  %v3631_v9 = vld [vmem:[%s4906_s0] sm:$0xff]   ;;  %v3640_v30 = vld [vmem:[%s4907_s1 + $0x1cc] ss:$12 sps:$4 sm:$0xff]  }
  0x19   :  { %3104 = vmatprep.subr.bf16.mxu1 %v3611_v41  ;;  %v3628_v12 = vld [vmem:[%s4907_s1 + $0x180] ss:$12 sps:$4 sm:$0xff]   ;;  %v3634_v18 = vld [vmem:[%s4907_s1 + $0x19c] ss:$12 sps:$4 sm:$0xff]   ;;  %v3632_v22 = vld [vmem:[%s4907_s1 + $0x198] ss:$12 sps:$4 sm:$0xff]  }
  0x1a   :  { %146 = vrot.lane.b32.xlu0 %v3892_v21, %s3756_s16  ;;  %148 = vrot.lane.b32.xlu1 %v3916_v27, %s3756_s16  ;;  %v4048_v20 = vld [vmem:[%s4907_s1 + $0x1a0] ss:$12 sps:$4 sm:$0xff]   ;;  %v4068_v29 = vld [vmem:[%s4907_s1 + $0x1b8] ss:$12 sps:$4 sm:$0xff]  }
  0x1b   :  { %649 = vmatpush1.bf16.msra.mxu0 %v3579_v26  ;;  %v3637_v23 = vld [vmem:[%s4907_s1 + $0x1b4] ss:$12 sps:$4 sm:$0xff]  }
  0x1c   :  { %650 = vmatprep.subr.bf16.mxu0 %v3580_v28  ;;  %3105 = vmatpush3.bf16.msra.mxu1 %v3612_v42  ;;  %v3635_v28 = vld [vmem:[%s4907_s1 + $0x1b0] ss:$12 sps:$4 sm:$0xff]  }
  0x1d   :  { %3106 = vmatprep.subr.bf16.mxu1 %v3616_v43 }
  0x1f   :  { %651 = vmatpush1.bf16.msra.mxu0 %v3582_v31  ;;  %v3638_v31 = vld [vmem:[%s4907_s1 + $0x1c8] ss:$12 sps:$4 sm:$0xff]  }
  0x20   :  { %652 = vmatprep.subr.bf16.mxu0 %v3583_v32  ;;  %3107 = vmatpush3.bf16.msra.mxu1 %v3617_v46 }
  0x21   :  { %3108 = vmatprep.subr.bf16.mxu1 %v3621_v47 }
  0x23   :  { %653 = vmatpush1.bf16.msra.mxu0 %v3586_v35 }
  0x24   :  { %654 = vmatprep.subr.bf16.mxu0 %v3587_v36  ;;  %3109 = vmatpush3.bf16.msra.mxu1 %v3622_v50  ;;  %v3757_v50 = vmov 0  }
  0x25   :  { %3110 = vmatprep.subr.bf16.mxu1 %v3626_v51  ;;  %v3645_v51 = vld [vmem:[%s4906_s0 + $0x78] sm:$0xff]  }
  0x27   :  { %655 = vmatpush1.bf16.msra.mxu0 %v3589_v39 }
  0x28   :  { %656 = vmatprep.subr.bf16.mxu0 %v3592_v40  ;;  %3111 = vmatpush3.bf16.msra.mxu1 %v3627_v54 }
  0x29   :  { %3400 = vmatprep.subr.bf16.mxu1 %v4028_v63 }
  0x2b   :  { %657 = vmatpush1.bf16.msra.mxu0 %v3595_v44 }
  0x2c   :  { %658 = vmatprep.subr.bf16.mxu0 %v3598_v45 }
  0x2f   :  { %659 = vmatpush1.bf16.msra.mxu0 %v3600_v48 }
  0x30   :  { %660 = vmatprep.subr.bf16.mxu0 %v3603_v49 }
  0x33   :  { %661 = vmatpush1.bf16.msra.mxu0 %v3605_v52 }
  0x34   :  { %662 = vmatprep.subr.bf16.mxu0 %v3608_v53 }
  0x37   :  { %663 = vmatpush1.bf16.msra.mxu0 %v3610_v55 }
  0x38   :  { %664 = vmatprep.subr.bf16.mxu0 %v3613_v56 }
  0x3b   :  { %665 = vmatpush1.bf16.msra.mxu0 %v3615_v57 }
  0x3c   :  { %666 = vmatprep.subr.bf16.mxu0 %v3618_v58 }
  0x3f   :  { %667 = vmatpush1.bf16.msra.mxu0 %v3620_v59 }
  0x40   :  { %668 = vmatprep.subr.bf16.mxu0 %v3623_v60 }
  0x43   :  { %669 = vmatpush1.bf16.msra.mxu0 %v3625_v61 }
  0x44   :  { %791 = vmatprep.subr.bf16.mxu0 %v3630_v62 }
  0x74   :  { %v117_v7 = vpop.permute.xlu0 %116  ;;  %v119_v11 = vpop.permute.xlu1 %118 }
  0x75   :  { %v166_v8 = vsel %vm155_vm0, %v3802_v3, %v117_v7  ;;  %v170_v16 = vsel %vm155_vm0, %v3783_v0, %v119_v11 }
  0x76   :  { %670 = vmatprep.mubr.bf16.mxu0 %v166_v8  ;;  %976 = vmatprep.mubr.bf16.mxu1 %v166_v8 }
  0x78   :  { %v113_v15 = vpop.permute.xlu0 %112  ;;  %v115_v0 = vpop.permute.xlu1 %114 }
  0x79   :  { %v158_v3 = vsel %vm155_vm0, %v3631_v9, %v113_v15  ;;  %v162_v25 = vsel %vm155_vm0, %v3788_v1, %v115_v0  ;;  %v4077_v1 = vld [vmem:[%s4907_s1 + $0x1d0] ss:$12 sps:$4 sm:$0xff]  }
  0x7a   :  { %671 = vmatmul.mubr.bf16.vlgmr.msra.gmra.mrb[0].mxu0 %v158_v3  ;;  %977 = vmatmul.mubr.bf16.vlgmr.msra.gmra.mrb[0].mxu1 %v158_v3 }
  0x7b   :  { %792 = vmatpush1.bf16.msra.mxu0 %v3628_v12  ;;  %680 = vmatprep.mubr.bf16.mxu0 %v170_v16 }
  0x7c   :  { %984 = vmatprep.mubr.bf16.mxu1 %v170_v16  ;;  %793 = vmatprep.subr.bf16.mxu0 %v3634_v18  ;;  %v121_v24 = vpop.permute.xlu0 %120  ;;  %v123_v32 = vpop.permute.xlu1 %122 }
  0x7d   :  { %3404 = vmatpush3.bf16.msra.mxu1 %v4028_v63  ;;  %v174_v26 = vsel %vm155_vm0, %v3795_v2, %v121_v24  ;;  %v178_v33 = vsel %vm155_vm0, %v3809_v4, %v123_v32 }
  0x7e   :  { %3401 = vmatprep.subr.bf16.mxu1 %v4048_v20 }
  0x7f   :  { %794 = vmatpush1.bf16.msra.mxu0 %v3632_v22 }
  0x80   :  { %795 = vmatprep.subr.bf16.mxu0 %v3637_v23  ;;  %v125_v34 = vpop.permute.xlu0 %124  ;;  %v127_v36 = vpop.permute.xlu1 %126 }
  0x81   :  { %3405 = vmatpush3.bf16.msra.mxu1 %v4048_v20  ;;  %v182_v35 = vsel %vm155_vm0, %v3814_v5, %v125_v34  ;;  %v186_v37 = vsel %vm155_vm0, %v3821_v6, %v127_v36 }
  0x82   :  { %681 = vmatmul.mubr.bf16.gmra.mrb[4].mxu0 %v162_v25  ;;  %985 = vmatmul.mubr.bf16.gmra.mrb[4].mxu1 %v162_v25 }
  0x83   :  { %690 = vmatprep.mubr.bf16.mxu0 %v174_v26  ;;  %992 = vmatprep.mubr.bf16.mxu1 %v174_v26 }
  0x84   :  { %796 = vmatpush1.bf16.msra.mxu0 %v3635_v28  ;;  %3402 = vmatprep.subr.bf16.mxu1 %v4068_v29  ;;  %v129_v38 = vpop.permute.xlu0 %128  ;;  %v131_v40 = vpop.permute.xlu1 %130 }
  0x85   :  { %797 = vmatprep.subr.bf16.mxu0 %v3640_v30  ;;  %3406 = vmatpush3.bf16.msra.mxu1 %v4068_v29  ;;  %v190_v39 = vsel %vm155_vm0, %v3839_v10, %v129_v38  ;;  %v194_v41 = vsel %vm155_vm0, %v3852_v13, %v131_v40 }
  0x86   :  { %3403 = vmatprep.subr.bf16.mxu1 %v4077_v1 }
  0x88   :  { %798 = vmatpush1.bf16.msra.mxu0 %v3638_v31  ;;  %v133_v42 = vpop.permute.xlu0 %132  ;;  %v135_v44 = vpop.permute.xlu1 %134 }
  0x89   :  { %3407 = vmatpush3.bf16.msra.mxu1 %v4077_v1  ;;  %3368 = vmatprep.subr.bf16.mxu0 %v4028_v63  ;;  %v198_v43 = vsel %vm155_vm0, %v3857_v14, %v133_v42  ;;  %v202_v45 = vsel %vm155_vm0, %v3872_v17, %v135_v44 }
  0x8a   :  { %691 = vmatmul.mubr.bf16.gmra.mrb[8].mxu0 %v166_v8  ;;  %993 = vmatmul.mubr.bf16.gmra.mrb[8].mxu1 %v166_v8 }
  0x8b   :  { %700 = vmatprep.mubr.bf16.mxu0 %v178_v33  ;;  %1000 = vmatprep.mubr.bf16.mxu1 %v178_v33 }
  0x8c   :  { %v147_v46 = vpop.permute.xlu0 %146  ;;  %v149_v48 = vpop.permute.xlu1 %148 }
  0x8d   :  { %v206_v47 = vsel %vm155_vm0, %v3882_v19, %v147_v46  ;;  %v210_v49 = vsel %vm155_vm0, %v3892_v21, %v149_v48 }
  0x92   :  { %701 = vmatmul.mubr.bf16.gmra.mrb[12].mxu0 %v170_v16  ;;  %1001 = vmatmul.mubr.bf16.gmra.mrb[12].mxu1 %v170_v16 }
  0x93   :  { %710 = vmatprep.mubr.bf16.mxu0 %v182_v35  ;;  %1008 = vmatprep.mubr.bf16.mxu1 %v182_v35 }
  0x9a   :  { %711 = vmatmul.mubr.bf16.gmra.mrb[16].mxu0 %v174_v26  ;;  %1009 = vmatmul.mubr.bf16.gmra.mrb[16].mxu1 %v174_v26 }
  0x9b   :  { %720 = vmatprep.mubr.bf16.mxu0 %v186_v37  ;;  %1016 = vmatprep.mubr.bf16.mxu1 %v186_v37 }
  0xa2   :  { %721 = vmatmul.mubr.bf16.gmra.mrb[20].mxu0 %v178_v33  ;;  %1017 = vmatmul.mubr.bf16.gmra.mrb[20].mxu1 %v178_v33 }
  0xa3   :  { %730 = vmatprep.mubr.bf16.mxu0 %v190_v39  ;;  %1024 = vmatprep.mubr.bf16.mxu1 %v190_v39 }
  0xaa   :  { %731 = vmatmul.mubr.bf16.gmra.mrb[24].mxu0 %v182_v35  ;;  %1025 = vmatmul.mubr.bf16.gmra.mrb[24].mxu1 %v182_v35 }
  0xab   :  { %740 = vmatprep.mubr.bf16.mxu0 %v194_v41  ;;  %1032 = vmatprep.mubr.bf16.mxu1 %v194_v41 }
  0xb2   :  { %741 = vmatmul.mubr.bf16.gmra.mrb[28].mxu0 %v186_v37  ;;  %1033 = vmatmul.mubr.bf16.gmra.mrb[28].mxu1 %v186_v37 }
  0xb3   :  { %750 = vmatprep.mubr.bf16.mxu0 %v198_v43  ;;  %1040 = vmatprep.mubr.bf16.mxu1 %v198_v43 }
  0xba   :  { %751 = vmatmul.mubr.bf16.gmra.mrb[32].mxu0 %v190_v39  ;;  %1041 = vmatmul.mubr.bf16.gmra.mrb[32].mxu1 %v190_v39 }
  0xbb   :  { %760 = vmatprep.mubr.bf16.mxu0 %v202_v45  ;;  %1048 = vmatprep.mubr.bf16.mxu1 %v202_v45 }
  0xc2   :  { %761 = vmatmul.mubr.bf16.gmra.mrb[36].mxu0 %v194_v41  ;;  %1049 = vmatmul.mubr.bf16.gmra.mrb[36].mxu1 %v194_v41 }
  0xc3   :  { %770 = vmatprep.mubr.bf16.mxu0 %v206_v47  ;;  %1056 = vmatprep.mubr.bf16.mxu1 %v206_v47 }
  0xca   :  { %771 = vmatmul.mubr.bf16.gmra.mrb[40].mxu0 %v198_v43  ;;  %1057 = vmatmul.mubr.bf16.gmra.mrb[40].mxu1 %v198_v43 }
  0xcb   :  { %780 = vmatprep.mubr.bf16.mxu0 %v210_v49  ;;  %1064 = vmatprep.mubr.bf16.mxu1 %v210_v49 }
  0xd2   :  { %781 = vmatmul.mubr.bf16.gmra.mrb[44].mxu0 %v202_v45  ;;  %1065 = vmatmul.mubr.bf16.gmra.mrb[44].mxu1 %v202_v45 }
  0xd3   :  { %823 = vmatprep.mubr.bf16.mxu0 %v3757_v50  ;;  %3384 = vmatprep.mubr.msk.bf16.mxu1 %vm155_vm0, %v3839_v10 }
  0xda   :  { %2960 = vmatmul.mubr.msk.bf16.vlgmr.msra.gmra.mrb[0].mxu0 %vm155_vm0, %v3795_v2  ;;  %3385 = vmatmul.mubr.msk.bf16.vlgmr.msra.gmra.mrb[48].mxu1 %vm155_vm0, %v3852_v13 }
  0xdb   :  { %3369 = vmatpush3.bf16.msra.mxu0 %v4028_v63  ;;  %833 = vmatprep.mubr.bf16.mxu0 %v3757_v50 }
  0xdc   :  { %3388 = vmatprep.mubr.msk.bf16.mxu1 %vm155_vm0, %v3857_v14  ;;  %3370 = vmatprep.subr.bf16.mxu0 %v4048_v20 }
  0xdf   :  { %3371 = vmatpush3.bf16.msra.mxu0 %v4048_v20 }
  0xe0   :  { %3372 = vmatprep.subr.bf16.mxu0 %v4068_v29 }
  0xe2   :  { %2961 = vmatmul.mubr.msk.bf16.gmra.mrb[4].mxu0 %vm155_vm0, %v3809_v4  ;;  %3389 = vmatmul.mubr.msk.bf16.gmra.mrb[52].mxu1 %vm155_vm0, %v3872_v17 }
  0xe3   :  { %843 = vmatprep.mubr.bf16.mxu0 %v3757_v50  ;;  %3392 = vmatprep.mubr.msk.bf16.mxu1 %vm155_vm0, %v3882_v19 }
  0xe4   :  { %3373 = vmatpush3.bf16.msra.mxu0 %v4068_v29 }
  0xe5   :  { %3374 = vmatprep.subr.bf16.mxu0 %v4077_v1 }
  0xe8   :  { %3375 = vmatpush3.bf16.msra.mxu0 %v4077_v1 }
  0xea   :  { %2962 = vmatmul.mubr.msk.bf16.gmra.mrb[8].mxu0 %vm155_vm0, %v3814_v5  ;;  %3393 = vmatmul.mubr.msk.bf16.gmra.mrb[56].mxu1 %vm155_vm0, %v3892_v21 }
  0xeb   :  { %853 = vmatprep.mubr.bf16.mxu0 %v3757_v50  ;;  %3396 = vmatprep.mubr.msk.bf16.mxu1 %vm155_vm0, %v3916_v27 }
  0xf2   :  { %2963 = vmatmul.mubr.msk.bf16.gmra.mrb[12].mxu0 %vm155_vm0, %v3821_v6  ;;  %3397 = vmatmul.mubr.msk.bf16.gmra.mrb[60].mxu1 %vm155_vm0, %v3645_v51 }
  0xf3   :  { %863 = vmatprep.mubr.bf16.mxu0 %v3757_v50 }
  0xfa   :  { %2964 = vmatmul.mubr.msk.bf16.gmra.mrb[16].mxu0 %vm155_vm0, %v3839_v10 }
  0xfb   :  { %873 = vmatprep.mubr.bf16.mxu0 %v3757_v50 }
 0x102   :  { %2965 = vmatmul.mubr.msk.bf16.gmra.mrb[20].mxu0 %vm155_vm0, %v3852_v13 }
 0x103   :  { %883 = vmatprep.mubr.bf16.mxu0 %v3757_v50 }
 0x10a   :  { %2966 = vmatmul.mubr.msk.bf16.gmra.mrb[24].mxu0 %vm155_vm0, %v3857_v14 }
 0x10b   :  { %893 = vmatprep.mubr.bf16.mxu0 %v3757_v50 }
 0x112   :  { %2967 = vmatmul.mubr.msk.bf16.gmra.mrb[28].mxu0 %vm155_vm0, %v3872_v17 }
 0x113   :  { %903 = vmatprep.mubr.bf16.mxu0 %v3757_v50 }
 0x11a   :  { %2968 = vmatmul.mubr.msk.bf16.gmra.mrb[32].mxu0 %vm155_vm0, %v3882_v19 }
 0x11b   :  { %913 = vmatprep.mubr.bf16.mxu0 %v3757_v50 }
 0x122   :  { %2969 = vmatmul.mubr.msk.bf16.gmra.mrb[36].mxu0 %vm155_vm0, %v3892_v21 }
 0x123   :  { %923 = vmatprep.mubr.bf16.mxu0 %v3757_v50 }
 0x12a   :  { %2970 = vmatmul.mubr.msk.bf16.gmra.mrb[40].mxu0 %vm155_vm0, %v3916_v27 }
 0x12b   :  { %933 = vmatprep.mubr.bf16.mxu0 %v3757_v50 }
 0x132   :  { %2971 = vmatmul.mubr.msk.bf16.gmra.mrb[44].mxu0 %vm155_vm0, %v3645_v51 }
 0x133   :  { %3376 = vmatprep.mubr.msk.bf16.mxu0 %vm155_vm0, %v3795_v2 }
 0x13a   :  { %3377 = vmatmul.mubr.msk.bf16.vlgmr.msra.gmra.mrb[48].mxu0 %vm155_vm0, %v3809_v4 }
 0x13b   :  { %3380 = vmatprep.mubr.msk.bf16.mxu0 %vm155_vm0, %v3814_v5 }
 0x142   :  { %3381 = vmatmul.mubr.msk.bf16.gmra.mrb[52].mxu0 %vm155_vm0, %v3821_v6 }
 0x14d   :  { %v3112_v10 = vpop.f32.mrb[0].mxu1 }
 0x14e   :  { %v3113_v13 = vpop.f32.mrb[1].mxu1 }
 0x14f   :  { %v4173_v14 = vadd.f32 %v3113_v13, %v3112_v10  ;;  %v3115_v17 = vpop.f32.mrb[2].mxu1 }
 0x150   :  { %v3116_v19 = vpop.f32.mrb[3].mxu1 }
 0x151   :  { %v4175_v21 = vadd.f32 %v3116_v19, %v3115_v17 }
 0x155   :  { %v3118_v27 = vpop.f32.mrb[4].mxu1 }
 0x156   :  { %v3119_v52 = vpop.f32.mrb[5].mxu1 }
 0x157   :  { %v4177_v2 = vadd.f32 %v3119_v52, %v3118_v27  ;;  %v3121_v53 = vpop.f32.mrb[6].mxu1 }
 0x158   :  { %v3122_v4 = vpop.f32.mrb[7].mxu1 }
 0x159   :  { %v4179_v54 = vadd.f32 %v3122_v4, %v3121_v53 }
 0x15d   :  { %v3124_v5 = vpop.f32.mrb[8].mxu1 }
 0x15e   :  { %v3125_v55 = vpop.f32.mrb[9].mxu1 }
 0x15f   :  { %v4181_v56 = vadd.f32 %v3125_v55, %v3124_v5  ;;  %v3127_v6 = vpop.f32.mrb[10].mxu1 }
 0x160   :  { %v3128_v57 = vpop.f32.mrb[11].mxu1 }
 0x161   :  { %v4183_v58 = vadd.f32 %v3128_v57, %v3127_v6 }
 0x165   :  { %v3130_v59 = vpop.f32.mrb[12].mxu1 }
 0x166   :  { %v3131_v60 = vpop.f32.mrb[13].mxu1 }
 0x167   :  { %v4185_v61 = vadd.f32 %v3131_v60, %v3130_v59  ;;  %v3133_v62 = vpop.f32.mrb[14].mxu1 }
 0x168   :  { %v3134_v63 = vpop.f32.mrb[15].mxu1 }
 0x169   :  { %v4187_v7 = vadd.f32 %v3134_v63, %v3133_v62 }
 0x16d   :  { %v3136_v8 = vpop.f32.mrb[16].mxu1 }
 0x16e   :  { %v3137_v9 = vpop.f32.mrb[17].mxu1 }
 0x16f   :  { %v3138_v11 = vadd.f32 %v3137_v9, %v3136_v8  ;;  %v3139_v12 = vpop.f32.mrb[18].mxu1 }
 0x170   :  { %v3140_v15 = vpop.f32.mrb[19].mxu1 }
 0x171   :  { %v3141_v16 = vadd.f32 %v3140_v15, %v3139_v12 }
 0x175   :  { %v3142_v18 = vpop.f32.mrb[20].mxu1 }
 0x176   :  { %v3143_v3 = vpop.f32.mrb[21].mxu1 }
 0x177   :  { %v3144_v20 = vadd.f32 %v3143_v3, %v3142_v18  ;;  %v3145_v22 = vpop.f32.mrb[22].mxu1 }
 0x178   :  { %v3146_v0 = vpop.f32.mrb[23].mxu1 }
 0x179   :  { %v3147_v23 = vadd.f32 %v3146_v0, %v3145_v22 }
 0x17d   :  { %v3148_v24 = vpop.f32.mrb[24].mxu1 }
 0x17e   :  { %v3149_v25 = vpop.f32.mrb[25].mxu1 }
 0x17f   :  { %v4189_v26 = vadd.f32 %v3149_v25, %v3148_v24  ;;  %v3151_v28 = vpop.f32.mrb[26].mxu1 }
 0x180   :  { %v3152_v29 = vpop.f32.mrb[27].mxu1 }
 0x181   :  { %v4191_v30 = vadd.f32 %v3152_v29, %v3151_v28 }
 0x185   :  { %v3154_v1 = vpop.f32.mrb[28].mxu1 }
 0x186   :  { %v3155_v31 = vpop.f32.mrb[29].mxu1 }
 0x187   :  { %v3156_v32 = vadd.f32 %v3155_v31, %v3154_v1  ;;  %v3157_v33 = vpop.f32.mrb[30].mxu1 }
 0x188   :  { %v3158_v34 = vpop.f32.mrb[31].mxu1 }
 0x189   :  { %v3159_v35 = vadd.f32 %v3158_v34, %v3157_v33 }
 0x18d   :  { %v3160_v36 = vpop.f32.mrb[32].mxu1 }
 0x18e   :  { %v3161_v37 = vpop.f32.mrb[33].mxu1 }
 0x18f   :  { %v4193_v38 = vadd.f32 %v3161_v37, %v3160_v36  ;;  %v3163_v39 = vpop.f32.mrb[34].mxu1 }
 0x190   :  { %v3164_v40 = vpop.f32.mrb[35].mxu1 }
 0x191   :  { %v4195_v41 = vadd.f32 %v3164_v40, %v3163_v39 }
 0x195   :  { %v3166_v42 = vpop.f32.mrb[36].mxu1 }
 0x196   :  { %v3167_v43 = vpop.f32.mrb[37].mxu1 }
 0x197   :  { %v4197_v44 = vadd.f32 %v3167_v43, %v3166_v42  ;;  %v3169_v45 = vpop.f32.mrb[38].mxu1 }
 0x198   :  { %v3170_v46 = vpop.f32.mrb[39].mxu1 }
 0x199   :  { %v4199_v47 = vadd.f32 %v3170_v46, %v3169_v45 }
 0x19d   :  { %v3172_v48 = vpop.f32.mrb[40].mxu1 }
 0x19e   :  { %v3173_v49 = vpop.f32.mrb[41].mxu1 }
 0x19f   :  { %v4201_v51 = vadd.f32 %v3173_v49, %v3172_v48  ;;  %v3175_v10 = vpop.f32.mrb[42].mxu1 }
 0x1a0   :  { %v3176_v13 = vpop.f32.mrb[43].mxu1 }
 0x1a1   :  { %v4203_v17 = vadd.f32 %v3176_v13, %v3175_v10 }
 0x1a5   :  { %v3178_v19 = vpop.f32.mrb[44].mxu1 }
 0x1a6   :  { %v3179_v27 = vpop.f32.mrb[45].mxu1 }
 0x1a7   :  { %v4205_v52 = vadd.f32 %v3179_v27, %v3178_v19  ;;  %v3181_v53 = vpop.f32.mrb[46].mxu1 }
 0x1a8   :  { %v3182_v4 = vpop.f32.mrb[47].mxu1 }
 0x1a9   :  { %v4207_v5 = vadd.f32 %v3182_v4, %v3181_v53 }
 0x1ad   :  { %v825_v55 = vpop.f32.mrb[0].mxu0  ;;  %v3386_v6 = vpop.f32.mrb[48].mxu1 }
 0x1ae   :  { %v1148_v57 = vadd.f32 %v3386_v6, %v3144_v20  ;;  %v827_v59 = vpop.f32.mrb[1].mxu0  ;;  %v1139_v60 = vpop.f32.mrb[49].mxu1  ;;  %v1202_v20 = vmax.f32 %v825_v55, 0.0 }
 0x1af   :  { %v1140_v62 = vadd.f32 %v3138_v11, %v1139_v60  ;;  %v829_v63 = vpop.f32.mrb[2].mxu0  ;;  %v3387_v8 = vpop.f32.mrb[50].mxu1  ;;  %v1203_v31 = vmax.f32 %v827_v59, 0.0 }
 0x1b0   :  { %v1234_v9 = vmax.f32 %v1148_v57, 0.0  ;;  %v1151_v12 = vadd.f32 %v3387_v8, %v3147_v23  ;;  %v831_v15 = vpop.f32.mrb[3].mxu0  ;;  %v1142_v18 = vpop.f32.mrb[51].mxu1  ;;  %v1205_v37 = vmax.f32 %v829_v63, 0.0 }
 0x1b1   :  { %v1228_v3 = vmax.f32 %v1140_v62, 0.0  ;;  %v1143_v22 = vadd.f32 %v3141_v16, %v1142_v18  ;;  %v1206_v23 = vmax.f32 %v831_v15, 0.0 }
 0x1b2   :  { %v1237_v0 = vmax.f32 %v1151_v12, 0.0 }
 0x1b3   :  { %v4209_v24 = vmax.f32 %v1228_v3, %v1234_v9  ;;  %v1231_v25 = vmax.f32 %v1143_v22, 0.0 }
 0x1b5   :  { %v4211_v28 = vmax.f32 %v1231_v25, %v1237_v0  ;;  %v835_v29 = vpop.f32.mrb[4].mxu0  ;;  %v3390_v1 = vpop.f32.mrb[52].mxu1 }
 0x1b6   :  { %v1208_v33 = vmax.f32 %v835_v29, 0.0  ;;  %v1164_v11 = vadd.f32 %v3390_v1, %v3156_v32  ;;  %v837_v34 = vpop.f32.mrb[5].mxu0  ;;  %v1155_v36 = vpop.f32.mrb[53].mxu1 }
 0x1b7   :  { %v1209_v39 = vmax.f32 %v837_v34, 0.0  ;;  %v1156_v40 = vadd.f32 %v4189_v26, %v1155_v36  ;;  %v839_v16 = vpop.f32.mrb[6].mxu0  ;;  %v3391_v42 = vpop.f32.mrb[54].mxu1 }
 0x1b8   :  { %v4214_v43 = vmax.f32 %v1202_v20, %v1208_v33  ;;  %v1246_v45 = vmax.f32 %v1164_v11, 0.0  ;;  %v1211_v46 = vmax.f32 %v839_v16, 0.0  ;;  %v1167_v48 = vadd.f32 %v3391_v42, %v3159_v35  ;;  %v841_v49 = vpop.f32.mrb[7].mxu0  ;;  %v1158_v10 = vpop.f32.mrb[55].mxu1 }
 0x1b9   :  { %v4216_v13 = vmax.f32 %v1203_v31, %v1209_v39  ;;  %v1240_v19 = vmax.f32 %v1156_v40, 0.0  ;;  %v1212_v32 = vmax.f32 %v841_v49, 0.0  ;;  %v1159_v27 = vadd.f32 %v4191_v30, %v1158_v10  ;;  %v3648_v40 = vld [vmem:[%s4908_s2 + $0x48] sm:$0xff]  }
 0x1ba   :  { %v4219_v53 = vmax.f32 %v1205_v37, %v1211_v46  ;;  %v1249_v4 = vmax.f32 %v1167_v48, 0.0  ;;  %v3649_v48 = vld [vmem:[%s4908_s2 + $0x8] sm:$0xff]  }
 0x1bb   :  { %v4221_v55 = vmax.f32 %v1240_v19, %v1246_v45  ;;  %v4223_v26 = vmax.f32 %v1206_v23, %v1212_v32  ;;  %v1243_v6 = vmax.f32 %v1159_v27, 0.0 }
 0x1bd   :  { %v4225_v57 = vmax.f32 %v1243_v6, %v1249_v4  ;;  %v845_v59 = vpop.f32.mrb[8].mxu0  ;;  %v3394_v35 = vpop.f32.mrb[56].mxu1 }
 0x1be   :  { %v1180_v60 = vadd.f32 %v3394_v35, %v4197_v44  ;;  %v847_v62 = vpop.f32.mrb[9].mxu0  ;;  %v1171_v63 = vpop.f32.mrb[57].mxu1  ;;  %v1214_v25 = vmax.f32 %v845_v59, 0.0  ;;  %v3650_v35 = vld [vmem:[%s4908_s2 + $0x50] sm:$0xff]  }
 0x1bf   :  { %v1172_v8 = vadd.f32 %v4193_v38, %v1171_v63  ;;  %v849_v9 = vpop.f32.mrb[10].mxu0  ;;  %v3395_v30 = vpop.f32.mrb[58].mxu1  ;;  %v1215_v29 = vmax.f32 %v847_v62, 0.0  ;;  %v3646_v38 = vld [vmem:[%s4908_s2 + $0x40] sm:$0xff]  }
 0x1c0   :  { %v1258_v12 = vmax.f32 %v1180_v60, 0.0  ;;  %v1183_v15 = vadd.f32 %v3395_v30, %v4199_v47  ;;  %v851_v18 = vpop.f32.mrb[11].mxu0  ;;  %v1174_v3 = vpop.f32.mrb[59].mxu1  ;;  %v1217_v1 = vmax.f32 %v849_v9, 0.0  ;;  %v3647_v47 = vld [vmem:[%s4908_s2] sm:$0xff]   ;;  %3200 = vmatprep.subr.bf16.mxu1 %v3646_v38 }
 0x1c1   :  { %v1252_v22 = vmax.f32 %v1172_v8, 0.0  ;;  %v1175_v0 = vadd.f32 %v4195_v41, %v1174_v3  ;;  %v1218_v33 = vmax.f32 %v851_v18, 0.0  ;;  %3201 = vmatpush3.bf16.msra.mxu1 %v3647_v47 }
 0x1c2   :  { %v1261_v20 = vmax.f32 %v1183_v15, 0.0  ;;  %3202 = vmatprep.subr.bf16.mxu1 %v3648_v40 }
 0x1c3   :  { %v4231_v31 = vmax.f32 %v1252_v22, %v1258_v12  ;;  %v1255_v44 = vmax.f32 %v1175_v0, 0.0 }
 0x1c5   :  { %v4239_v11 = vmax.f32 %v1255_v44, %v1261_v20  ;;  %v855_v34 = vpop.f32.mrb[12].mxu0  ;;  %v3398_v41 = vpop.f32.mrb[60].mxu1  ;;  %3203 = vmatpush3.bf16.msra.mxu1 %v3649_v48 }
 0x1c6   :  { %v1220_v36 = vmax.f32 %v855_v34, 0.0  ;;  %v1196_v37 = vadd.f32 %v3398_v41, %v4205_v52  ;;  %v857_v23 = vpop.f32.mrb[13].mxu0  ;;  %v1187_v39 = vpop.f32.mrb[61].mxu1  ;;  %3204 = vmatprep.subr.bf16.mxu1 %v3650_v35 }
 0x1c7   :  { %v1221_v16 = vmax.f32 %v857_v23, 0.0  ;;  %v1188_v42 = vadd.f32 %v4201_v51, %v1187_v39  ;;  %v859_v45 = vpop.f32.mrb[14].mxu0  ;;  %v3399_v46 = vpop.f32.mrb[62].mxu1 }
 0x1c8   :  { %v4249_v49 = vmax.f32 %v1214_v25, %v1220_v36  ;;  %v1270_v10 = vmax.f32 %v1196_v37, 0.0  ;;  %v1223_v52 = vmax.f32 %v859_v45, 0.0  ;;  %v1199_v19 = vadd.f32 %v3399_v46, %v4207_v5  ;;  %v861_v32 = vpop.f32.mrb[15].mxu0  ;;  %v1190_v27 = vpop.f32.mrb[63].mxu1  ;;  %v3651_v5 = vld [vmem:[%s4908_s2 + $0x10] sm:$0xff]  }
 0x1c9   :  { %v4252_v4 = vmax.f32 %v1215_v29, %v1221_v16  ;;  %v1264_v6 = vmax.f32 %v1188_v42, 0.0  ;;  %v1224_v59 = vmax.f32 %v861_v32, 0.0  ;;  %v1191_v51 = vadd.f32 %v4203_v17, %v1190_v27  ;;  %3205 = vmatpush3.bf16.msra.mxu1 %v3651_v5 }
 0x1ca   :  { %v4258_v60 = vmax.f32 %v1217_v1, %v1223_v52  ;;  %v1273_v62 = vmax.f32 %v1199_v19, 0.0 }
 0x1cb   :  { %v4263_v63 = vmax.f32 %v1264_v6, %v1270_v10  ;;  %v4265_v8 = vmax.f32 %v1218_v33, %v1224_v59  ;;  %v1267_v9 = vmax.f32 %v1191_v51, 0.0  ;;  %v3460_v17 = vpack.i.bf16 %v4252_v4, %v4249_v49 }
 0x1cd   :  { %v4269_v30 = vmax.f32 %v1267_v9, %v1273_v62  ;;  %3461 = vrot.lane.b32.xlu0 %v3460_v17, %s3758_s19  ;;  %v865_v12 = vpop.f32.mrb[16].mxu0 }
 0x1ce   :  { %v867_v15 = vpop.f32.mrb[17].mxu0  ;;  %v1226_v22 = vmax.f32 %v865_v12, 0.0 }
 0x1cf   :  { %v869_v18 = vpop.f32.mrb[18].mxu0  ;;  %v1227_v0 = vmax.f32 %v867_v15, 0.0 }
 0x1d0   :  { %v871_v3 = vpop.f32.mrb[19].mxu0  ;;  %v1229_v25 = vmax.f32 %v869_v18, 0.0 }
 0x1d1   :  { %v1230_v41 = vmax.f32 %v871_v3, 0.0 }
 0x1d5   :  { %v875_v29 = vpop.f32.mrb[20].mxu0 }
 0x1d6   :  { %v1232_v1 = vmax.f32 %v875_v29, 0.0  ;;  %v877_v20 = vpop.f32.mrb[21].mxu0 }
 0x1d7   :  { %v1233_v44 = vmax.f32 %v877_v20, 0.0  ;;  %v879_v38 = vpop.f32.mrb[22].mxu0 }
 0x1d8   :  { %v4272_v33 = vmax.f32 %v1226_v22, %v1232_v1  ;;  %v1235_v47 = vmax.f32 %v879_v38, 0.0  ;;  %v881_v34 = vpop.f32.mrb[23].mxu0 }
 0x1d9   :  { %v4274_v36 = vmax.f32 %v1227_v0, %v1233_v44  ;;  %v1236_v37 = vmax.f32 %v881_v34, 0.0 }
 0x1da   :  { %v4276_v23 = vmax.f32 %v1229_v25, %v1235_v47 }
 0x1db   :  { %v4278_v39 = vmax.f32 %v1230_v41, %v1236_v37 }
 0x1dd   :  { %v885_v40 = vpop.f32.mrb[24].mxu0 }
 0x1de   :  { %v887_v16 = vpop.f32.mrb[25].mxu0  ;;  %v1238_v46 = vmax.f32 %v885_v40, 0.0 }
 0x1df   :  { %v889_v42 = vpop.f32.mrb[26].mxu0  ;;  %v1239_v48 = vmax.f32 %v887_v16, 0.0 }
 0x1e0   :  { %v891_v45 = vpop.f32.mrb[27].mxu0  ;;  %v1241_v10 = vmax.f32 %v889_v42, 0.0 }
 0x1e1   :  { %v1242_v62 = vmax.f32 %v891_v45, 0.0 }
 0x1e5   :  { %v895_v52 = vpop.f32.mrb[28].mxu0 }
 0x1e6   :  { %v1244_v19 = vmax.f32 %v895_v52, 0.0  ;;  %v897_v32 = vpop.f32.mrb[29].mxu0 }
 0x1e7   :  { %v1245_v27 = vmax.f32 %v897_v32, 0.0  ;;  %v899_v6 = vpop.f32.mrb[30].mxu0 }
 0x1e8   :  { %v4280_v59 = vmax.f32 %v1238_v46, %v1244_v19  ;;  %v1247_v51 = vmax.f32 %v899_v6, 0.0  ;;  %v901_v35 = vpop.f32.mrb[31].mxu0 }
 0x1e9   :  { %v4282_v5 = vmax.f32 %v1239_v48, %v1245_v27  ;;  %v1248_v9 = vmax.f32 %v901_v35, 0.0 }
 0x1ea   :  { %v4284_v17 = vmax.f32 %v1241_v10, %v1247_v51 }
 0x1eb   :  { %v4286_v12 = vmax.f32 %v1242_v62, %v1248_v9 }
 0x1ed   :  { %v905_v15 = vpop.f32.mrb[32].mxu0 }
 0x1ee   :  { %v907_v18 = vpop.f32.mrb[33].mxu0  ;;  %v1250_v0 = vmax.f32 %v905_v15, 0.0 }
 0x1ef   :  { %v909_v3 = vpop.f32.mrb[34].mxu0  ;;  %v1251_v25 = vmax.f32 %v907_v18, 0.0 }
 0x1f0   :  { %v911_v22 = vpop.f32.mrb[35].mxu0  ;;  %v1253_v29 = vmax.f32 %v909_v3, 0.0 }
 0x1f1   :  { %v1254_v40 = vmax.f32 %v911_v22, 0.0 }
 0x1f5   :  { %v915_v1 = vpop.f32.mrb[36].mxu0 }
 0x1f6   :  { %v1256_v20 = vmax.f32 %v915_v1, 0.0  ;;  %v917_v44 = vpop.f32.mrb[37].mxu0 }
 0x1f7   :  { %v1257_v38 = vmax.f32 %v917_v44, 0.0  ;;  %v919_v47 = vpop.f32.mrb[38].mxu0 }
 0x1f8   :  { %v4288_v34 = vmax.f32 %v1250_v0, %v1256_v20  ;;  %v1259_v41 = vmax.f32 %v919_v47, 0.0  ;;  %v921_v37 = vpop.f32.mrb[39].mxu0 }
 0x1f9   :  { %v4290_v16 = vmax.f32 %v1251_v25, %v1257_v38  ;;  %v1260_v42 = vmax.f32 %v921_v37, 0.0 }
 0x1fa   :  { %v4292_v45 = vmax.f32 %v1253_v29, %v1259_v41 }
 0x1fb   :  { %v4294_v46 = vmax.f32 %v1254_v40, %v1260_v42 }
 0x1fd   :  { %v925_v48 = vpop.f32.mrb[40].mxu0 }
 0x1fe   :  { %v927_v10 = vpop.f32.mrb[41].mxu0  ;;  %v1262_v32 = vmax.f32 %v925_v48, 0.0 }
 0x1ff   :  { %v929_v52 = vpop.f32.mrb[42].mxu0  ;;  %v1263_v27 = vmax.f32 %v927_v10, 0.0 }
 0x200   :  { %v931_v19 = vpop.f32.mrb[43].mxu0  ;;  %v1265_v6 = vmax.f32 %v929_v52, 0.0 }
 0x201   :  { %v1266_v0 = vmax.f32 %v931_v19, 0.0  ;;  %v3652_v19 = vld [vmem:[%s4908_s2 + $0x58] sm:$0xff]  }
 0x202   :  { %3206 = vmatprep.subr.bf16.mxu1 %v3652_v19  ;;  %v3661_v19 = vld [vmem:[%s4908_s2 + $0x38] sm:$0xff]  }
 0x205   :  { %v935_v51 = vpop.f32.mrb[44].mxu0 }
 0x206   :  { %v1268_v35 = vmax.f32 %v935_v51, 0.0  ;;  %v937_v62 = vpop.f32.mrb[45].mxu0 }
 0x207   :  { %v1269_v9 = vmax.f32 %v937_v62, 0.0  ;;  %v939_v15 = vpop.f32.mrb[46].mxu0 }
 0x208   :  { %v4296_v18 = vmax.f32 %v1262_v32, %v1268_v35  ;;  %v1271_v3 = vmax.f32 %v939_v15, 0.0  ;;  %v941_v22 = vpop.f32.mrb[47].mxu0  ;;  %v3654_v35 = vld [vmem:[%s4908_s2 + $0x60] sm:$0xff]  }
 0x209   :  { %v4298_v25 = vmax.f32 %v1263_v27, %v1269_v9  ;;  %v1272_v29 = vmax.f32 %v941_v22, 0.0  ;;  %v3655_v15 = vld [vmem:[%s4908_s2 + $0x20] sm:$0xff]  }
 0x20a   :  { %v4300_v1 = vmax.f32 %v1265_v6, %v1271_v3 }
 0x20b   :  { %v4302_v20 = vmax.f32 %v1266_v0, %v1272_v29 }
 0x20d   :  { %v3378_v44 = vpop.f32.mrb[48].mxu0 }
 0x20e   :  { %v1116_v38 = vadd.f32 %v3378_v44, %v4177_v2  ;;  %v1107_v47 = vpop.f32.mrb[49].mxu0  ;;  %v3653_v2 = vld [vmem:[%s4908_s2 + $0x18] sm:$0xff]  }
 0x20f   :  { %v1108_v41 = vadd.f32 %v4173_v14, %v1107_v47  ;;  %v3379_v37 = vpop.f32.mrb[50].mxu0  ;;  %3207 = vmatpush3.bf16.msra.mxu1 %v3653_v2 }
 0x210   :  { %v1210_v40 = vmax.f32 %v1116_v38, 0.0  ;;  %v1119_v42 = vadd.f32 %v3379_v37, %v4179_v54  ;;  %v1110_v48 = vpop.f32.mrb[51].mxu0  ;;  %3208 = vmatprep.subr.bf16.mxu1 %v3654_v35  ;;  %v3656_v38 = vld [vmem:[%s4908_s2 + $0x68] sm:$0xff]   ;;  %v3662_v35 = vld [vmem:[%s4908_s2 + $0xc0] sm:$0xff]  }
 0x211   :  { %v1204_v10 = vmax.f32 %v1108_v41, 0.0  ;;  %v1111_v52 = vadd.f32 %v4175_v21, %v1110_v48  ;;  %v3657_v41 = vld [vmem:[%s4908_s2 + $0x28] sm:$0xff]   ;;  %v3475_v48 = vpack.i.bf16 %v4274_v36, %v4272_v33 }
 0x212   :  { %v1213_v32 = vmax.f32 %v1119_v42, 0.0  ;;  %v3659_v42 = vld [vmem:[%s4908_s2 + $0x30] sm:$0xff]  }
 0x213   :  { %v4314_v27 = vmax.f32 %v1204_v10, %v1210_v40  ;;  %v1207_v14 = vmax.f32 %v1111_v52, 0.0  ;;  %3209 = vmatpush3.bf16.msra.mxu1 %v3655_v15  ;;  %v3480_v10 = vpack.i.bf16 %v4276_v23, %v4209_v24  ;;  %v3660_v52 = vld [vmem:[%s4908_s2 + $0x78] sm:$0xff]  }
 0x214   :  { %3210 = vmatprep.subr.bf16.mxu1 %v3656_v38 }
 0x215   :  { %v4316_v6 = vmax.f32 %v1207_v14, %v1213_v32  ;;  %v3382_v54 = vpop.f32.mrb[52].mxu0  ;;  %v3485_v32 = vpack.i.bf16 %v4211_v28, %v4278_v39  ;;  %v3490_v2 = vpack.i.bf16 %v4314_v27, %v4216_v13 }
 0x216   :  { %v1132_v51 = vadd.f32 %v3382_v54, %v4185_v61  ;;  %v1123_v21 = vpop.f32.mrb[53].mxu0  ;;  %v3500_v54 = vpack.i.bf16 %v4219_v53, %v4214_v43 }
 0x217   :  { %v1124_v62 = vadd.f32 %v4181_v56, %v1123_v21  ;;  %v3383_v9 = vpop.f32.mrb[54].mxu0  ;;  %3211 = vmatpush3.bf16.msra.mxu1 %v3657_v41  ;;  %v3495_v14 = vpack.i.bf16 %v4316_v6, %v4223_v26  ;;  %v3510_v21 = vpack.i.bf16 %v4286_v12, %v4284_v17 }
 0x218   :  { %v1222_v3 = vmax.f32 %v1132_v51, 0.0  ;;  %v1135_v22 = vadd.f32 %v3383_v9, %v4187_v7  ;;  %v1126_v0 = vpop.f32.mrb[55].mxu0  ;;  %v3505_v51 = vpack.i.bf16 %v4282_v5, %v4280_v59 }
 0x219   :  { %v1216_v29 = vmax.f32 %v1124_v62, 0.0  ;;  %v1127_v61 = vadd.f32 %v4183_v58, %v1126_v0  ;;  %v3658_v58 = vld [vmem:[%s4908_s2 + $0x70] sm:$0xff]  }
 0x21a   :  { %v1225_v44 = vmax.f32 %v1135_v22, 0.0  ;;  %3212 = vmatprep.subr.bf16.mxu1 %v3658_v58 }
 0x21b   :  { %v4331_v56 = vmax.f32 %v1216_v29, %v1222_v3  ;;  %v1219_v47 = vmax.f32 %v1127_v61, 0.0  ;;  %3213 = vmatpush3.bf16.msra.mxu1 %v3659_v42 }
 0x21c   :  { %3214 = vmatprep.subr.bf16.mxu1 %v3660_v52 }
 0x21d   :  { %v4336_v7 = vmax.f32 %v1219_v47, %v1225_v44  ;;  %v3465_v37 = vpack.i.bf16 %v4258_v60, %v4331_v56 }
 0x21f   :  { %3466 = vrot.lane.b32.xlu1 %v3465_v37, %s3758_s19  ;;  %v3470_v40 = vpack.i.bf16 %v4336_v7, %v4265_v8  ;;  %3215 = vmatpush3.bf16.msra.mxu1 %v3661_v19 }
 0x220   :  { %3228 = vmatprep.subr.bf16.mxu1 %v3662_v35 }
 0x221   :  { %3471 = vrot.lane.b32.xlu0 %v3470_v40, %s3758_s19 }
 0x223   :  { %3476 = vrot.lane.b32.xlu1 %v3475_v48, %s3758_s19 }
 0x225   :  { %3481 = vrot.lane.b32.xlu0 %v3480_v10, %s3758_s19 }
 0x227   :  { %3486 = vrot.lane.b32.xlu1 %v3485_v32, %s3758_s19 }
 0x229   :  { %3491 = vrot.lane.b32.xlu0 %v3490_v2, %s3758_s19 }
 0x22b   :  { %3496 = vrot.lane.b32.xlu1 %v3495_v14, %s3758_s19 }
 0x22d   :  { %3501 = vrot.lane.b32.xlu0 %v3500_v54, %s3758_s19 }
 0x22f   :  { %3506 = vrot.lane.b32.xlu1 %v3505_v51, %s3758_s19 }
 0x231   :  { %3511 = vrot.lane.b32.xlu0 %v3510_v21, %s3758_s19 }
 0x23f   :  { %v3462_v62 = vpop.permute.xlu0 %3461 }
 0x240   :  { %v3464_v9 = vunpack.i.h.bf16 %v3462_v62  ;;  %v3463_v15 = vunpack.i.l.bf16 %v3462_v62 }
 0x242   :  { %v1423_v0 = vsel %vm1418_vm1, %v3463_v15, %v3464_v9 }
 0x243   :  { %v1485_v42 = vmax.f32 %v4249_v49, %v1423_v0 }
 0x291   :  { %v3467_v3 = vpop.permute.xlu1 %3466 }
 0x292   :  { %v3468_v22 = vunpack.i.l.bf16 %v3467_v3  ;;  %v3469_v61 = vunpack.i.h.bf16 %v3467_v3 }
 0x293   :  { %v3472_v29 = vpop.permute.xlu0 %3471 }
 0x294   :  { %v1424_v44 = vsel %vm1418_vm1, %v3464_v9, %v3468_v22  ;;  %v3474_v38 = vunpack.i.h.bf16 %v3472_v29  ;;  %v3473_v47 = vunpack.i.l.bf16 %v3472_v29 }
 0x295   :  { %v3477_v41 = vpop.permute.xlu1 %3476  ;;  %v1486_v19 = vmax.f32 %v4252_v4, %v1424_v44 }
 0x296   :  { %v1425_v37 = vsel %vm1418_vm1, %v3469_v61, %v3473_v47  ;;  %v1426_v58 = vsel %vm1418_vm1, %v3473_v47, %v3474_v38  ;;  %v3479_v40 = vunpack.i.h.bf16 %v3477_v41  ;;  %v3478_v48 = vunpack.i.l.bf16 %v3477_v41 }
 0x297   :  { %v4388_v10 = vpop.permute.xlu0 %3481  ;;  %v1488_v52 = vmax.f32 %v4258_v60, %v1425_v37  ;;  %v1489_v32 = vmax.f32 %v4265_v8, %v1426_v58  ;;  %v3515_v60 = vpack.i.bf16 %v4225_v57, %v4221_v55  ;;  %v1490_v41 = vmax.f32 %v4336_v7, %v3474_v38 }
 0x298   :  { %v3483_v2 = vunpack.i.l.bf16 %v4388_v10  ;;  %v1427_v21 = vsel %vm1418_vm1, %v3478_v48, %v3479_v40  ;;  %v3484_v49 = vunpack.i.h.bf16 %v4388_v10  ;;  %v1487_v38 = vmax.f32 %v4331_v56, %v3468_v22  ;;  %v3669_v10 = vld [vmem:[%s4908_s2 + $0x98] sm:$0xff]  }
 0x299   :  { %v4394_v14 = vpop.permute.xlu1 %3486  ;;  %v4396_v54 = vpack.c.bf16 %v1488_v52, %v1485_v42  ;;  %v1519_v51 = vpack.c.bf16 %v1489_v32, %v1486_v19  ;;  %v1491_v61 = vmax.f32 %v4272_v33, %v1427_v21 }
 0x29a   :  { %v3489_v35 = vunpack.i.h.bf16 %v4394_v14  ;;  %v3488_v62 = vunpack.i.l.bf16 %v4394_v14  ;;  %v1428_v8 = vsel %vm1418_vm1, %v3479_v40, %v3483_v2 }
 0x29b   :  { %1539 = vrot.lane.b32.xlu1 %v4396_v54, %s3758_s19  ;;  %1541 = vrot.lane.b32.xlu0 %v1519_v51, %s3758_s19  ;;  %v3492_v4 = vpop.permute.xlu0 %3491  ;;  %v1492_v19 = vmax.f32 %v4274_v36, %v1428_v8 }
 0x29c   :  { %v1429_v9 = vsel %vm1418_vm1, %v3484_v49, %v3488_v62  ;;  %v1430_v15 = vsel %vm1418_vm1, %v3488_v62, %v3489_v35  ;;  %v3494_v3 = vunpack.i.h.bf16 %v3492_v4  ;;  %v3493_v0 = vunpack.i.l.bf16 %v3492_v4 }
 0x29d   :  { %v3497_v29 = vpop.permute.xlu1 %3496  ;;  %v1494_v44 = vmax.f32 %v4276_v23, %v1429_v9  ;;  %v1495_v47 = vmax.f32 %v4278_v39, %v1430_v15 }
 0x29e   :  { %v3499_v37 = vunpack.i.h.bf16 %v3497_v29  ;;  %v3498_v58 = vunpack.i.l.bf16 %v3497_v29  ;;  %v4417_v42 = vmax.f32 %v4314_v27, %v3494_v3  ;;  %v1420_v40 = vsel %vm1418_vm1, %v3493_v0, %v3494_v3  ;;  %v3665_v29 = vld [vmem:[%s4908_s2 + $0x88] sm:$0xff]  }
 0x29f   :  { %3516 = vrot.lane.b32.xlu1 %v3515_v60, %s3758_s19  ;;  %v3502_v48 = vpop.permute.xlu0 %3501  ;;  %v1521_v52 = vpack.c.bf16 %v1494_v44, %v1491_v61  ;;  %v4428_v27 = vpack.c.bf16 %v1495_v47, %v1492_v19  ;;  %v1480_v32 = vmax.f32 %v4216_v13, %v1420_v40  ;;  %v4444_v13 = vpack.c.bf16 %v1490_v41, %v1487_v38  ;;  %v3666_v47 = vld [vmem:[%s4908_s2 + $0xd0] sm:$0xff]  }
 0x2a0   :  { %v4423_v33 = vmax.f32 %v4316_v6, %v3499_v37  ;;  %v1422_v23 = vsel %vm1418_vm1, %v3498_v58, %v3499_v37  ;;  %v3504_v39 = vunpack.i.h.bf16 %v3502_v48  ;;  %v3503_v7 = vunpack.i.l.bf16 %v3502_v48  ;;  %v3667_v37 = vld [vmem:[%s4908_s2 + $0x90] sm:$0xff]   ;;  %v3673_v48 = vld [vmem:[%s4908_s2 + $0xa8] sm:$0xff]  }
 0x2a1   :  { %1545 = vrot.lane.b32.xlu0 %v1521_v52, %s3758_s19  ;;  %v1483_v14 = vmax.f32 %v4223_v26, %v1422_v23  ;;  %v4438_v56 = vpop.permute.xlu1 %3506  ;;  %v3520_v3 = vpack.i.bf16 %v4290_v16, %v4288_v34  ;;  %v1496_v61 = vmax.f32 %v4211_v28, %v3489_v35  ;;  %v3525_v44 = vpack.i.bf16 %v4292_v45, %v4231_v31  ;;  %v3674_v19 = vld [vmem:[%s4908_s2 + $0xf0] sm:$0xff]   ;;  %v3698_v23 = vld [vmem:[%s4908_s2 + $0x180] sm:$0xff]  }
 0x2a2   :  { %v1517_v36 = vpack.c.bf16 %v4423_v33, %v4417_v42  ;;  %v1421_v6 = vsel %vm1418_vm1, %v3504_v39, %v3498_v58  ;;  %v1419_v21 = vsel %vm1418_vm1, %v3503_v7, %v3493_v0  ;;  %v3509_v9 = vunpack.i.h.bf16 %v4438_v56  ;;  %v3700_v39 = vld [vmem:[%s4908_s2 + $0x1c8] sm:$0xff]   ;;  %v3675_v38 = vld [vmem:[%s4908_s2 + $0xb0] sm:$0xff]   ;;  %v3727_v33 = vld [vmem:[%s4908_s2 + $0x2c0] sm:$0xff]  }
 0x2a3   :  { %v1482_v49 = vmax.f32 %v4219_v53, %v1421_v6  ;;  %v1479_v62 = vmax.f32 %v4214_v43, %v1419_v21  ;;  %1547 = vrot.lane.b32.xlu1 %v4428_v27, %s3758_s19  ;;  %v4442_v22 = vpop.permute.xlu0 %3511  ;;  %v1516_v26 = vpack.c.bf16 %v1483_v14, %v1480_v32  ;;  %v3663_v53 = vld [vmem:[%s4908_s2 + $0x80] sm:$0xff]   ;;  %v3664_v43 = vld [vmem:[%s4908_s2 + $0xc8] sm:$0xff]   ;;  %v3508_v15 = vunpack.i.l.bf16 %v4438_v56  ;;  %v3704_v32 = vld [vmem:[%s4908_s2 + $0x1d0] sm:$0xff]  }
 0x2a4   :  { %v3514_v4 = vunpack.i.h.bf16 %v4442_v22  ;;  %v3513_v60 = vunpack.i.l.bf16 %v4442_v22  ;;  %v1493_v41 = vmax.f32 %v4209_v24, %v3483_v2  ;;  %v3530_v28 = vpack.i.bf16 %v4239_v11, %v4294_v46  ;;  %v3668_v24 = vld [vmem:[%s4908_s2 + $0xd8] sm:$0xff]   ;;  %v3671_v2 = vld [vmem:[%s4908_s2 + $0xa0] sm:$0xff]   ;;  %v3702_v7 = vld [vmem:[%s4908_s2 + $0x188] sm:$0xff]  }
 0x2a5   :  { %v1515_v8 = vpack.c.bf16 %v1482_v49, %v1479_v62  ;;  %1543 = vrot.lane.b32.xlu0 %v4444_v13, %s3758_s19  ;;  %2551 = vmatprep.mubr.bf16.mxu1 %v1516_v26  ;;  %v3676_v14 = vld [vmem:[%s4908_s2 + $0xf8] sm:$0xff]   ;;  %v3678_v21 = vld [vmem:[%s4908_s2 + $0x140] sm:$0xff]   ;;  %v3706_v49 = vld [vmem:[%s4908_s2 + $0x190] sm:$0xff]  }
 0x2a6   :  { %v1433_v0 = vsel %vm1418_vm1, %v3513_v60, %v3514_v4  ;;  %v1523_v58 = vpack.c.bf16 %v1496_v61, %v1493_v41  ;;  %v3677_v6 = vld [vmem:[%s4908_s2 + $0xb8] sm:$0xff]   ;;  %v3712_v60 = vld [vmem:[%s4908_s2 + $0x1e0] sm:$0xff]   ;;  %v3680_v41 = vld [vmem:[%s4908_s2 + $0x148] sm:$0xff]  }
 0x2a7   :  { %1563 = vrot.lane.b32.xlu1 %v1521_v52, %s3756_s16  ;;  %2552 = vmatmul.mubr.bf16.vlgmr.msra.gmra.mrb[64].mxu1 %v1515_v8  ;;  %v1500_v35 = vmax.f32 %v4284_v17, %v1433_v0  ;;  %v3696_v52 = vld [vmem:[%s4908_s2 + $0x1c0] sm:$0xff]   ;;  %v3708_v62 = vld [vmem:[%s4908_s2 + $0x1d8] sm:$0xff]   ;;  %v3716_v8 = vld [vmem:[%s4908_s2 + $0x1e8] sm:$0xff]  }
 0x2a8   :  { %2559 = vmatprep.mubr.bf16.mxu1 %v1519_v51  ;;  %3229 = vmatpush3.bf16.msra.mxu1 %v3663_v53  ;;  %v1431_v51 = vsel %vm1418_vm1, %v3508_v15, %v3509_v9  ;;  %v3710_v26 = vld [vmem:[%s4908_s2 + $0x198] sm:$0xff]   ;;  %v3714_v53 = vld [vmem:[%s4908_s2 + $0x1a0] sm:$0xff]   ;;  %v3720_v15 = vld [vmem:[%s4908_s2 + $0x1f0] sm:$0xff]  }
 0x2a9   :  { %3521 = vrot.lane.b32.xlu0 %v3520_v3, %s3758_s19  ;;  %3230 = vmatprep.subr.bf16.mxu1 %v3664_v43  ;;  %v1497_v40 = vmax.f32 %v4280_v59, %v1431_v51  ;;  %v3670_v59 = vld [vmem:[%s4908_s2 + $0xe0] sm:$0xff]   ;;  %v3718_v43 = vld [vmem:[%s4908_s2 + $0x1a8] sm:$0xff]   ;;  %v3722_v3 = vld [vmem:[%s4908_s2 + $0x1b0] sm:$0xff]  }
 0x2aa   :  { %3284 = vmatprep.subr.bf16.mxu0 %v3696_v52  ;;  %v3724_v0 = vld [vmem:[%s4908_s2 + $0x1f8] sm:$0xff]   ;;  %v3681_v42 = vld [vmem:[%s4908_s2 + $0x108] sm:$0xff]  }
 0x2ab   :  { %3526 = vrot.lane.b32.xlu1 %v3525_v44, %s3758_s19  ;;  %v1524_v17 = vpack.c.bf16 %v1500_v35, %v1497_v40  ;;  %3285 = vmatpush3.bf16.msra.mxu0 %v3698_v23  ;;  %v3679_v44 = vld [vmem:[%s4908_s2 + $0x100] sm:$0xff]   ;;  %v3684_v22 = vld [vmem:[%s4908_s2 + $0x158] sm:$0xff]  }
 0x2ac   :  { %3231 = vmatpush3.bf16.msra.mxu1 %v3665_v29  ;;  %3286 = vmatprep.subr.bf16.mxu0 %v3700_v39 }
 0x2ad   :  { %3531 = vrot.lane.b32.xlu0 %v3530_v28, %s3758_s19  ;;  %3232 = vmatprep.subr.bf16.mxu1 %v3666_v47  ;;  %v3725_v28 = vld [vmem:[%s4908_s2 + $0x1b8] sm:$0xff]  }
 0x2af   :  { %1549 = vrot.lane.b32.xlu1 %v1523_v58, %s3758_s19  ;;  %2560 = vmatmul.mubr.bf16.gmra.mrb[68].mxu1 %v4396_v54  ;;  %v3672_v54 = vld [vmem:[%s4908_s2 + $0xe8] sm:$0xff]  }
 0x2b0   :  { %3233 = vmatpush3.bf16.msra.mxu1 %v3667_v37  ;;  %3287 = vmatpush3.bf16.msra.mxu0 %v3702_v7 }
 0x2b1   :  { %1569 = vrot.lane.b32.xlu0 %v1524_v17, %s3756_s16  ;;  %3234 = vmatprep.subr.bf16.mxu1 %v3668_v24 }
 0x2b2   :  { %3288 = vmatprep.subr.bf16.mxu0 %v3704_v32 }
 0x2b3   :  { %1587 = vrot.lane.b32.xlu1 %v1524_v17, %s3759_s4 }
 0x2b4   :  { %3235 = vmatpush3.bf16.msra.mxu1 %v3669_v10  ;;  %3289 = vmatpush3.bf16.msra.mxu0 %v3706_v49 }
 0x2b5   :  { %3236 = vmatprep.subr.bf16.mxu1 %v3670_v59  ;;  %3290 = vmatprep.subr.bf16.mxu0 %v3708_v62  ;;  %v3683_v59 = vld [vmem:[%s4908_s2 + $0x110] sm:$0xff]  }
 0x2b7   :  { %1567 = vrot.lane.b32.xlu1 %v1523_v58, %s3756_s16  ;;  %v3682_v58 = vld [vmem:[%s4908_s2 + $0x150] sm:$0xff]  }
 0x2b8   :  { %3237 = vmatpush3.bf16.msra.mxu1 %v3671_v2  ;;  %3291 = vmatpush3.bf16.msra.mxu0 %v3710_v26 }
 0x2b9   :  { %3238 = vmatprep.subr.bf16.mxu1 %v3672_v54  ;;  %3292 = vmatprep.subr.bf16.mxu0 %v3712_v60 }
 0x2bc   :  { %3239 = vmatpush3.bf16.msra.mxu1 %v3673_v48  ;;  %3293 = vmatpush3.bf16.msra.mxu0 %v3714_v53 }
 0x2bd   :  { %3240 = vmatprep.subr.bf16.mxu1 %v3674_v19  ;;  %3294 = vmatprep.subr.bf16.mxu0 %v3716_v8  ;;  %v3689_v8 = vld [vmem:[%s4908_s2 + $0x128] sm:$0xff]  }
 0x2c0   :  { %3241 = vmatpush3.bf16.msra.mxu1 %v3675_v38  ;;  %3295 = vmatpush3.bf16.msra.mxu0 %v3718_v43 }
 0x2c1   :  { %3242 = vmatprep.subr.bf16.mxu1 %v3676_v14  ;;  %3296 = vmatprep.subr.bf16.mxu0 %v3720_v15  ;;  %v3687_v14 = vld [vmem:[%s4908_s2 + $0x120] sm:$0xff]   ;;  %v3690_v15 = vld [vmem:[%s4908_s2 + $0x170] sm:$0xff]  }
 0x2c4   :  { %3243 = vmatpush3.bf16.msra.mxu1 %v3677_v6  ;;  %3297 = vmatpush3.bf16.msra.mxu0 %v3722_v3 }
 0x2c5   :  { %3256 = vmatprep.subr.bf16.mxu1 %v3678_v21  ;;  %3298 = vmatprep.subr.bf16.mxu0 %v3724_v0 }
 0x2c8   :  { %3299 = vmatpush3.bf16.msra.mxu0 %v3725_v28  ;;  %v3694_v28 = vld [vmem:[%s4908_s2 + $0x240] sm:$0xff]  }
 0x2c9   :  { %3340 = vmatprep.subr.bf16.mxu0 %v3727_v33 }
 0x30d   :  { %v1540_v29 = vpop.permute.xlu1 %1539  ;;  %v4572_v61 = vpop.permute.xlu0 %1541 }
 0x30e   :  { %v1610_v47 = vsel %vm1418_vm1, %v1517_v36, %v1540_v29  ;;  %v1552_v51 = vsel %vm1418_vm1, %v1540_v29, %v4572_v61 }
 0x30f   :  { %2600 = vmatprep.mubr.bf16.mxu1 %v1552_v51 }
 0x310   :  { %2601 = vmatmul.mubr.bf16.vlgmr.msra.gmra.mrb[72].mxu1 %v1610_v47 }
 0x311   :  { %3257 = vmatpush3.bf16.msra.mxu1 %v3679_v44  ;;  %v3517_v35 = vpop.permute.xlu1 %3516 }
 0x312   :  { %v3519_v36 = vunpack.i.h.bf16 %v3517_v35  ;;  %v3518_v37 = vunpack.i.l.bf16 %v3517_v35  ;;  %3258 = vmatprep.subr.bf16.mxu1 %v3680_v41  ;;  %v3691_v41 = vld [vmem:[%s4908_s2 + $0x130] sm:$0xff]  }
 0x313   :  { %v1546_v40 = vpop.permute.xlu0 %1545 }
 0x314   :  { %v1432_v24 = vsel %vm1418_vm1, %v3509_v9, %v3518_v37  ;;  %v1434_v17 = vsel %vm1418_vm1, %v3514_v4, %v3519_v36  ;;  %v1614_v9 = vsel %vm1418_vm1, %v4444_v13, %v1546_v40  ;;  %v3686_v13 = vld [vmem:[%s4908_s2 + $0x160] sm:$0xff]   ;;  %v1502_v19 = vmax.f32 %v4225_v57, %v3519_v36  ;;  %v3688_v57 = vld [vmem:[%s4908_s2 + $0x168] sm:$0xff]  }
 0x315   :  { %3259 = vmatpush3.bf16.msra.mxu1 %v3681_v42  ;;  %v4604_v10 = vpop.permute.xlu1 %1547  ;;  %v1498_v2 = vmax.f32 %v4282_v5, %v1432_v24  ;;  %v1501_v54 = vmax.f32 %v4286_v12, %v1434_v17  ;;  %v3685_v12 = vld [vmem:[%s4908_s2 + $0x118] sm:$0xff]   ;;  %v1499_v23 = vmax.f32 %v4221_v55, %v3518_v37  ;;  %v3540_v42 = vpack.i.bf16 %v4302_v20, %v4300_v1  ;;  %v3695_v36 = vld [vmem:[%s4908_s2 + $0x200] sm:$0xff]   ;;  %v3699_v17 = vld [vmem:[%s4908_s2 + $0x208] sm:$0xff]  }
 0x316   :  { %v1554_v56 = vsel %vm1418_vm1, %v1546_v40, %v4604_v10  ;;  %3260 = vmatprep.subr.bf16.mxu1 %v3682_v58  ;;  %v3545_v24 = vpack.i.bf16 %v4269_v30, %v4263_v63 }
 0x317   :  { %v4616_v4 = vpop.permute.xlu0 %1543  ;;  %2608 = vmatprep.mubr.bf16.mxu1 %v1554_v56  ;;  %v1525_v48 = vpack.c.bf16 %v1501_v54, %v1498_v2  ;;  %v1526_v49 = vpack.c.bf16 %v1502_v19, %v1499_v23  ;;  %v3705_v2 = vld [vmem:[%s4908_s2 + $0x258] sm:$0xff]  }
 0x318   :  { %2609 = vmatmul.mubr.bf16.gmra.mrb[76].mxu1 %v1614_v9  ;;  %v1553_v37 = vsel %vm1418_vm1, %v4572_v61, %v4616_v4  ;;  %v3701_v61 = vld [vmem:[%s4908_s2 + $0x250] sm:$0xff]   ;;  %v3707_v56 = vld [vmem:[%s4908_s2 + $0x218] sm:$0xff]   ;;  %v3715_v9 = vld [vmem:[%s4908_s2 + $0x228] sm:$0xff]  }
 0x319   :  { %3261 = vmatpush3.bf16.msra.mxu1 %v3683_v59  ;;  %v4620_v5 = vpop.permute.xlu1 %1563  ;;  %1571 = vrot.lane.b32.xlu1 %v1525_v48, %s3756_s16  ;;  %v3703_v59 = vld [vmem:[%s4908_s2 + $0x210] sm:$0xff]  }
 0x31a   :  { %1589 = vrot.lane.b32.xlu0 %v1525_v48, %s3759_s4  ;;  %3262 = vmatprep.subr.bf16.mxu1 %v3684_v22  ;;  %v1618_v52 = vsel %vm155_vm0, %v4616_v4, %v4620_v5  ;;  %v3709_v22 = vld [vmem:[%s4908_s2 + $0x260] sm:$0xff]   ;;  %v3717_v48 = vld [vmem:[%s4908_s2 + $0x270] sm:$0xff]  }
 0x31b   :  { %v3522_v39 = vpop.permute.xlu0 %3521  ;;  %2649 = vmatprep.mubr.bf16.mxu1 %v1618_v52  ;;  %v3711_v4 = vld [vmem:[%s4908_s2 + $0x220] sm:$0xff]   ;;  %v3721_v52 = vld [vmem:[%s4908_s2 + $0x278] sm:$0xff]  }
 0x31c   :  { %v3524_v7 = vunpack.i.h.bf16 %v3522_v39  ;;  %v3523_v38 = vunpack.i.l.bf16 %v3522_v39 }
 0x31d   :  { %3263 = vmatpush3.bf16.msra.mxu1 %v3685_v12  ;;  %v3527_v32 = vpop.permute.xlu1 %3526  ;;  %v3719_v12 = vld [vmem:[%s4908_s2 + $0x230] sm:$0xff]  }
 0x31e   :  { %v3528_v6 = vunpack.i.l.bf16 %v3527_v32  ;;  %1565 = vrot.lane.b32.xlu0 %v4428_v27, %s3756_s16  ;;  %3264 = vmatprep.subr.bf16.mxu1 %v3686_v13  ;;  %v1435_v55 = vsel %vm1418_vm1, %v3523_v38, %v3524_v7  ;;  %v3529_v62 = vunpack.i.h.bf16 %v3527_v32  ;;  %v3723_v13 = vld [vmem:[%s4908_s2 + $0x238] sm:$0xff]  }
 0x31f   :  { %v3532_v21 = vpop.permute.xlu0 %3531  ;;  %v1503_v3 = vmax.f32 %v4288_v34, %v1435_v55  ;;  %v3692_v34 = vld [vmem:[%s4908_s2 + $0x178] sm:$0xff]  }
 0x320   :  { %v1436_v26 = vsel %vm1418_vm1, %v3524_v7, %v3528_v6  ;;  %v3534_v60 = vunpack.i.h.bf16 %v3532_v21  ;;  %v3533_v53 = vunpack.i.l.bf16 %v3532_v21  ;;  %v1505_v35 = vmax.f32 %v4231_v31, %v3528_v6  ;;  %v3697_v31 = vld [vmem:[%s4908_s2 + $0x248] sm:$0xff]  }
 0x321   :  { %3265 = vmatpush3.bf16.msra.mxu1 %v3687_v14  ;;  %v1504_v29 = vmax.f32 %v4290_v16, %v1436_v26  ;;  %v1550_v58 = vpop.permute.xlu1 %1549 }
 0x322   :  { %v1437_v27 = vsel %vm1418_vm1, %v3529_v62, %v3533_v53  ;;  %v1438_v43 = vsel %vm1418_vm1, %v3533_v53, %v3534_v60  ;;  %1573 = vrot.lane.b32.xlu0 %v1526_v49, %s3756_s16  ;;  %3266 = vmatprep.subr.bf16.mxu1 %v3688_v57  ;;  %v1508_v16 = vmax.f32 %v4239_v11, %v3534_v60  ;;  %v3726_v53 = vld [vmem:[%s4908_s2 + $0x300] sm:$0xff]  }
 0x323   :  { %v1506_v0 = vmax.f32 %v4292_v45, %v1437_v27  ;;  %v1507_v44 = vmax.f32 %v4294_v46, %v1438_v43  ;;  %v3535_v45 = vpack.i.bf16 %v4298_v25, %v4296_v18  ;;  %v3693_v46 = vld [vmem:[%s4908_s2 + $0x138] sm:$0xff]   ;;  %v4684_v11 = vpop.permute.xlu0 %1569  ;;  %v1555_v54 = vsel %vm1418_vm1, %v4604_v10, %v1550_v58  ;;  %v3713_v10 = vld [vmem:[%s4908_s2 + $0x268] sm:$0xff]  }
 0x324   :  { %v4688_v33 = vpack.c.bf16 %v1508_v16, %v1505_v35  ;;  %v1622_v40 = vsel %vm155_vm0, %v1550_v58, %v4684_v11  ;;  %v3731_v16 = vld [vmem:[%s4908_s2 + $0x288] sm:$0xff]   ;;  %v3735_v35 = vld [vmem:[%s4908_s2 + $0x318] sm:$0xff]  }
 0x325   :  { %3267 = vmatpush3.bf16.msra.mxu1 %v3689_v8  ;;  %v4658_v47 = vpack.c.bf16 %v1506_v0, %v1503_v3  ;;  %v4660_v51 = vpack.c.bf16 %v1507_v44, %v1504_v29  ;;  %v1588_v21 = vpop.permute.xlu1 %1587  ;;  %v3729_v3 = vld [vmem:[%s4908_s2 + $0x308] sm:$0xff]  }
 0x326   :  { %3268 = vmatprep.subr.bf16.mxu1 %v3690_v15  ;;  %v3728_v15 = vld [vmem:[%s4908_s2 + $0x280] sm:$0xff]   ;;  %v3730_v44 = vld [vmem:[%s4908_s2 + $0x2c8] sm:$0xff]  }
 0x327   :  { %1593 = vrot.lane.b32.xlu1 %v4658_v47, %s3759_s4  ;;  %1595 = vrot.lane.b32.xlu0 %v4660_v51, %s3759_s4 }
 0x329   :  { %3269 = vmatpush3.bf16.msra.mxu1 %v3691_v41  ;;  %v1568_v26 = vpop.permute.xlu1 %1567 }
 0x32a   :  { %3270 = vmatprep.subr.bf16.mxu1 %v3692_v34  ;;  %v1627_v27 = vsel %vm1599_vm2, %v1568_v26, %v1588_v21 }
 0x32b   :  { %1591 = vrot.lane.b32.xlu1 %v1526_v49, %s3759_s4  ;;  %3536 = vrot.lane.b32.xlu0 %v3535_v45, %s3758_s19 }
 0x32d   :  { %3271 = vmatpush3.bf16.msra.mxu1 %v3693_v46  ;;  %v3733_v46 = vld [vmem:[%s4908_s2 + $0x2d0] sm:$0xff]  }
 0x32e   :  { %3312 = vmatprep.subr.bf16.mxu1 %v3694_v28  ;;  %v3734_v28 = vld [vmem:[%s4908_s2 + $0x290] sm:$0xff]  }
 0x32f   :  { %3541 = vrot.lane.b32.xlu1 %v3540_v42, %s3758_s19  ;;  %1597 = vrot.lane.b32.xlu0 %v4688_v33, %s3759_s4 }
 0x330   :  { %2650 = vmatmul.mubr.bf16.vlgmr.msra.gmra.mrb[80].mxu1 %v1553_v37 }
 0x331   :  { %2657 = vmatprep.mubr.bf16.mxu1 %v1622_v40  ;;  %3313 = vmatpush3.bf16.msra.mxu1 %v3695_v36  ;;  %v3736_v40 = vld [vmem:[%s4908_s2 + $0x2d8] sm:$0xff]  }
 0x332   :  { %3314 = vmatprep.subr.bf16.mxu1 %v3697_v31 }
 0x333   :  { %3546 = vrot.lane.b32.xlu1 %v3545_v24, %s3758_s19  ;;  %v3737_v24 = vld [vmem:[%s4908_s2 + $0x298] sm:$0xff]  }
 0x335   :  { %3315 = vmatpush3.bf16.msra.mxu1 %v3699_v17  ;;  %v3739_v17 = vld [vmem:[%s4908_s2 + $0x2e0] sm:$0xff]  }
 0x336   :  { %3316 = vmatprep.subr.bf16.mxu1 %v3701_v61 }
 0x338   :  { %2658 = vmatmul.mubr.bf16.gmra.mrb[84].mxu1 %v1555_v54 }
 0x339   :  { %3317 = vmatpush3.bf16.msra.mxu1 %v3703_v59  ;;  %v3740_v59 = vld [vmem:[%s4908_s2 + $0x2a0] sm:$0xff]  }
 0x33a   :  { %3318 = vmatprep.subr.bf16.mxu1 %v3705_v2  ;;  %v3742_v2 = vld [vmem:[%s4908_s2 + $0x2e8] sm:$0xff]  }
 0x33d   :  { %3319 = vmatpush3.bf16.msra.mxu1 %v3707_v56  ;;  %v3744_v56 = vld [vmem:[%s4908_s2 + $0x330] sm:$0xff]  }
 0x33e   :  { %3320 = vmatprep.subr.bf16.mxu1 %v3709_v22  ;;  %v3745_v22 = vld [vmem:[%s4908_s2 + $0x2f0] sm:$0xff]  }
 0x341   :  { %3321 = vmatpush3.bf16.msra.mxu1 %v3711_v4 }
 0x342   :  { %3322 = vmatprep.subr.bf16.mxu1 %v3713_v10 }
 0x345   :  { %3323 = vmatpush3.bf16.msra.mxu1 %v3715_v9 }
 0x346   :  { %3324 = vmatprep.subr.bf16.mxu1 %v3717_v48  ;;  %v3746_v48 = vld [vmem:[%s4908_s2 + $0x2b0] sm:$0xff]  }
 0x349   :  { %3325 = vmatpush3.bf16.msra.mxu1 %v3719_v12 }
 0x34a   :  { %3326 = vmatprep.subr.bf16.mxu1 %v3721_v52 }
 0x34d   :  { %3327 = vmatpush3.bf16.msra.mxu1 %v3723_v13  ;;  %v3747_v13 = vld [vmem:[%s4908_s2 + $0x338] sm:$0xff]  }
 0x34e   :  { %2813 = vmatprep.subr.bf16.mxu1 %v3757_v50 }
 0x37a   :  { %v3216_v19 = vpop.f32.mrb[64].mxu1 }
 0x37b   :  { %v3217_v23 = vpop.f32.mrb[65].mxu1 }
 0x37c   :  { %v4749_v39 = vadd.f32 %v3217_v23, %v3216_v19  ;;  %v3219_v7 = vpop.f32.mrb[66].mxu1  ;;  %v3748_v19 = vld [vmem:[%s4908_s2 + $0x2f8] sm:$0xff]  }
 0x37d   :  { %v3220_v38 = vpop.f32.mrb[67].mxu1 }
 0x37e   :  { %v4751_v32 = vadd.f32 %v3220_v38, %v3219_v7  ;;  %v3749_v7 = vld [vmem:[%s4908_s2 + $0x2b8] sm:$0xff]  }
 0x382   :  { %v3222_v14 = vpop.f32.mrb[68].mxu1 }
 0x383   :  { %v3223_v6 = vpop.f32.mrb[69].mxu1 }
 0x384   :  { %v4753_v57 = vadd.f32 %v3223_v6, %v3222_v14  ;;  %v3225_v55 = vpop.f32.mrb[70].mxu1  ;;  %v3750_v14 = vld [vmem:[%s4908_s2 + $0x340] sm:$0xff]  }
 0x385   :  { %v3226_v49 = vpop.f32.mrb[71].mxu1 }
 0x386   :  { %v4755_v62 = vadd.f32 %v3226_v49, %v3225_v55 }
 0x38b   :  { %v1572_v41 = vpop.permute.xlu1 %1571 }
 0x38c   :  { %v4757_v60 = vpop.permute.xlu0 %1589  ;;  %v1578_v31 = vsel %vm155_vm0, %v4684_v11, %v1572_v41  ;;  %v3738_v11 = vld [vmem:[%s4908_s2 + $0x320] sm:$0xff]  }
 0x38d   :  { %v1600_v8 = vsel %vm1599_vm2, %v1588_v21, %v4757_v60  ;;  %v3751_v21 = vld [vmem:[%s4908_s2 + $0x348] sm:$0xff]  }
 0x38e   :  { %2747 = vmatprep.mubr.bf16.mxu1 %v1600_v8 }
 0x38f   :  { %2748 = vmatmul.mubr.bf16.vlgmr.msra.gmra.mrb[88].mxu1 %v1627_v27  ;;  %v3754_v27 = vld [vmem:[%s4908_s2 + $0x360] sm:$0xff]  }
 0x390   :  { %2814 = vmatpush1.bf16.msra.mxu1 %v3726_v53  ;;  %v1566_v43 = vpop.permute.xlu0 %1565  ;;  %v3753_v53 = vld [vmem:[%s4908_s2 + $0x358] sm:$0xff]  }
 0x391   :  { %v1576_v0 = vsel %vm155_vm0, %v4620_v5, %v1566_v43  ;;  %v1577_v29 = vsel %vm155_vm0, %v1566_v43, %v1568_v26  ;;  %2815 = vmatprep.subr.bf16.mxu1 %v3757_v50  ;;  %v3732_v5 = vld [vmem:[%s4908_s2 + $0x310] sm:$0xff]  }
 0x392   :  { %2698 = vmatprep.mubr.bf16.mxu0 %v1577_v29 }
 0x393   :  { %2699 = vmatmul.mubr.bf16.vlgmr.msra.gmra.mrb[56].mxu0 %v1576_v0 }
 0x394   :  { %3341 = vmatpush3.bf16.msra.mxu0 %v3728_v15  ;;  %2816 = vmatpush1.bf16.msra.mxu1 %v3729_v3  ;;  %v1574_v34 = vpop.permute.xlu0 %1573  ;;  %v3755_v3 = vld [vmem:[%s4908_s2 + $0x368] sm:$0xff]  }
 0x395   :  { %v1579_v45 = vsel %vm155_vm0, %v1572_v41, %v1574_v34  ;;  %3342 = vmatprep.subr.bf16.mxu0 %v3730_v44  ;;  %2817 = vmatprep.subr.bf16.mxu1 %v3757_v50 }
 0x396   :  { %2706 = vmatprep.mubr.bf16.mxu0 %v1579_v45 }
 0x398   :  { %3343 = vmatpush3.bf16.msra.mxu0 %v3731_v16  ;;  %2818 = vmatpush1.bf16.msra.mxu1 %v3732_v5 }
 0x399   :  { %v1594_v42 = vpop.permute.xlu1 %1593  ;;  %3344 = vmatprep.subr.bf16.mxu0 %v3733_v46  ;;  %v4795_v36 = vpop.permute.xlu0 %1595  ;;  %2819 = vmatprep.subr.bf16.mxu1 %v3757_v50 }
 0x39a   :  { %v1602_v37 = vsel %vm1599_vm2, %v1594_v42, %v4795_v36  ;;  %v1631_v58 = vsel %vm1599_vm2, %v1574_v34, %v1594_v42 }
 0x39b   :  { %2707 = vmatmul.mubr.bf16.gmra.mrb[60].mxu0 %v1578_v31  ;;  %2755 = vmatprep.mubr.bf16.mxu1 %v1602_v37 }
 0x39c   :  { %3345 = vmatpush3.bf16.msra.mxu0 %v3734_v28  ;;  %2820 = vmatpush1.bf16.msra.mxu1 %v3735_v35 }
 0x39d   :  { %2796 = vmatprep.mubr.bf16.mxu0 %v4658_v47  ;;  %2756 = vmatmul.mubr.bf16.gmra.mrb[92].mxu1 %v1631_v58  ;;  %v1592_v61 = vpop.permute.xlu1 %1591  ;;  %v3741_v47 = vld [vmem:[%s4908_s2 + $0x328] sm:$0xff]   ;;  %v3537_v4 = vpop.permute.xlu0 %3536 }
 0x39e   :  { %3346 = vmatprep.subr.bf16.mxu0 %v3736_v40  ;;  %2821 = vmatprep.subr.bf16.mxu1 %v3757_v50  ;;  %v3539_v12 = vunpack.i.h.bf16 %v3537_v4  ;;  %v3538_v52 = vunpack.i.l.bf16 %v3537_v4  ;;  %v1601_v49 = vsel %vm1599_vm2, %v4757_v60, %v1592_v61 }
 0x39f   :  { %3094 = vmatprep.mubr.msk.bf16.mxu1 %vm1418_vm1, %v4688_v33  ;;  %v3743_v33 = vld [vmem:[%s4908_s2 + $0x2a8] sm:$0xff]  }
 0x3a0   :  { %3347 = vmatpush3.bf16.msra.mxu0 %v3737_v24  ;;  %2822 = vmatpush1.bf16.msra.mxu1 %v3738_v11  ;;  %v1439_v38 = vsel %vm1418_vm1, %v3538_v52, %v3539_v12 }
 0x3a1   :  { %3348 = vmatprep.subr.bf16.mxu0 %v3739_v17  ;;  %2823 = vmatprep.subr.bf16.mxu1 %v3757_v50  ;;  %v3542_v54 = vpop.permute.xlu1 %3541  ;;  %v1509_v55 = vmax.f32 %v4296_v18, %v1439_v38  ;;  %v1598_v18 = vpop.permute.xlu0 %1597 }
 0x3a2   :  { %v3544_v10 = vunpack.i.h.bf16 %v3542_v54  ;;  %v3543_v9 = vunpack.i.l.bf16 %v3542_v54  ;;  %v1603_v60 = vsel %vm1599_vm2, %v4795_v36, %v1598_v18 }
 0x3a4   :  { %3349 = vmatpush3.bf16.msra.mxu0 %v3740_v59  ;;  %2824 = vmatpush1.bf16.msra.mxu1 %v3741_v47  ;;  %v1441_v23 = vsel %vm1418_vm1, %v3543_v9, %v3544_v10 }
 0x3a5   :  { %3350 = vmatprep.subr.bf16.mxu0 %v3742_v2  ;;  %2825 = vmatprep.subr.bf16.mxu1 %v3757_v50  ;;  %v1512_v6 = vmax.f32 %v4300_v1, %v1441_v23  ;;  %v3752_v1 = vld [vmem:[%s4908_s2 + $0x350] sm:$0xff]   ;;  %v3547_v8 = vpop.permute.xlu1 %3546 }
 0x3a6   :  { %v3549_v43 = vunpack.i.h.bf16 %v3547_v8  ;;  %v3548_v15 = vunpack.i.l.bf16 %v3547_v8 }
 0x3a7   :  { %v1530_v26 = vpack.c.bf16 %v1512_v6, %v1509_v55 }
 0x3a8   :  { %3351 = vmatpush3.bf16.msra.mxu0 %v3743_v33  ;;  %2826 = vmatpush1.bf16.msra.mxu1 %v3744_v56  ;;  %v1514_v0 = vmax.f32 %v4269_v30, %v3549_v43  ;;  %v1511_v29 = vmax.f32 %v4263_v63, %v3548_v15  ;;  %v1440_v44 = vsel %vm1418_vm1, %v3539_v12, %v3548_v15 }
 0x3a9   :  { %3352 = vmatprep.subr.bf16.mxu0 %v3745_v22  ;;  %2827 = vmatprep.subr.bf16.mxu1 %v3757_v50  ;;  %v1442_v41 = vsel %vm1418_vm1, %v3544_v10, %v3549_v43  ;;  %v1510_v16 = vmax.f32 %v4298_v25, %v1440_v44 }
 0x3aa   :  { %v1532_v34 = vpack.c.bf16 %v1514_v0, %v1511_v29  ;;  %v1513_v5 = vmax.f32 %v4302_v20, %v1442_v41 }
 0x3ac   :  { %3353 = vmatpush3.bf16.msra.mxu0 %v3746_v48  ;;  %2828 = vmatpush1.bf16.msra.mxu1 %v3747_v13  ;;  %v1531_v45 = vpack.c.bf16 %v1513_v5, %v1510_v16 }
 0x3ad   :  { %3354 = vmatprep.subr.bf16.mxu0 %v3748_v19  ;;  %2829 = vmatprep.subr.bf16.mxu1 %v3757_v50 }
 0x3b0   :  { %3355 = vmatpush3.bf16.msra.mxu0 %v3749_v7  ;;  %2830 = vmatpush1.bf16.msra.mxu1 %v3750_v14 }
 0x3b1   :  { %2831 = vmatprep.subr.bf16.mxu1 %v3757_v50 }
 0x3b3   :  { %2797 = vmatmul.mubr.bf16.vlgmr.msra.gmra.mrb[64].mxu0 %v1601_v49 }
 0x3b4   :  { %2804 = vmatprep.mubr.bf16.mxu0 %v1530_v26  ;;  %2832 = vmatpush1.bf16.msra.mxu1 %v3751_v21 }
 0x3b5   :  { %2833 = vmatprep.subr.bf16.mxu1 %v3757_v50 }
 0x3b8   :  { %2834 = vmatpush1.bf16.msra.mxu1 %v3752_v1 }
 0x3b9   :  { %2835 = vmatprep.subr.bf16.mxu1 %v3757_v50 }
 0x3bb   :  { %2805 = vmatmul.mubr.bf16.gmra.mrb[68].mxu0 %v1603_v60 }
 0x3bc   :  { %2836 = vmatpush1.bf16.msra.mxu1 %v3753_v53 }
 0x3bd   :  { %2837 = vmatprep.subr.bf16.mxu1 %v3757_v50 }
 0x3c0   :  { %2838 = vmatpush1.bf16.msra.mxu1 %v3754_v27 }
 0x3c1   :  { %2839 = vmatprep.subr.bf16.mxu1 %v3757_v50 }
 0x3c4   :  { %2840 = vmatpush1.bf16.msra.mxu1 %v3755_v3 }
 0x3c7   :  { %2846 = vmatmul.mubr.bf16.vlgmr.msra.gmra.mrb[96].mxu1 %v4660_v51 }
 0x3c8   :  { %3095 = vmatprep.mubr.msk.bf16.mxu1 %vm1418_vm1, %v1532_v34 }
 0x3cf   :  { %2854 = vmatmul.mubr.bf16.gmra.mrb[100].mxu1 %v1531_v45 }
 0x3e3   :  { %v3244_v50 = vpop.f32.mrb[72].mxu1 }
 0x3e4   :  { %v3245_v30 = vpop.f32.mrb[73].mxu1 }
 0x3e5   :  { %v3246_v46 = vadd.f32 %v3245_v30, %v3244_v50  ;;  %v3247_v63 = vpop.f32.mrb[74].mxu1 }
 0x3e6   :  { %v3248_v28 = vpop.f32.mrb[75].mxu1 }
 0x3e7   :  { %v2603_v35 = vadd.f32 %v3246_v46, %v4749_v39  ;;  %v3249_v42 = vadd.f32 %v3248_v28, %v3247_v63 }
 0x3e9   :  { %v2606_v36 = vadd.f32 %v3249_v42, %v4751_v32 }
 0x3eb   :  { %v3250_v31 = vpop.f32.mrb[76].mxu1 }
 0x3ec   :  { %v3251_v51 = vpop.f32.mrb[77].mxu1 }
 0x3ed   :  { %v3252_v37 = vadd.f32 %v3251_v51, %v3250_v31  ;;  %v3253_v58 = vpop.f32.mrb[78].mxu1 }
 0x3ee   :  { %v3254_v40 = vpop.f32.mrb[79].mxu1 }
 0x3ef   :  { %v2611_v25 = vadd.f32 %v3252_v37, %v4753_v57  ;;  %v3255_v20 = vadd.f32 %v3254_v40, %v3253_v58 }
 0x3f1   :  { %v2614_v24 = vadd.f32 %v3255_v20, %v4755_v62 }
 0x403   :  { %v3272_v11 = vpop.f32.mrb[80].mxu1 }
 0x404   :  { %v3273_v17 = vpop.f32.mrb[81].mxu1 }
 0x405   :  { %v3274_v61 = vadd.f32 %v3273_v17, %v3272_v11  ;;  %v3275_v59 = vpop.f32.mrb[82].mxu1 }
 0x406   :  { %v3276_v47 = vpop.f32.mrb[83].mxu1 }
 0x407   :  { %v2652_v2 = vadd.f32 %v3274_v61, %v2603_v35  ;;  %v3277_v39 = vadd.f32 %v3276_v47, %v3275_v59 }
 0x409   :  { %v2655_v54 = vadd.f32 %v3277_v39, %v2606_v36 }
 0x40b   :  { %v3278_v33 = vpop.f32.mrb[84].mxu1 }
 0x40c   :  { %v3279_v32 = vpop.f32.mrb[85].mxu1 }
 0x40d   :  { %v3280_v56 = vadd.f32 %v3279_v32, %v3278_v33  ;;  %v3281_v22 = vpop.f32.mrb[86].mxu1 }
 0x40e   :  { %v3282_v4 = vpop.f32.mrb[87].mxu1 }
 0x40f   :  { %v2660_v10 = vadd.f32 %v3280_v56, %v2611_v25  ;;  %v3283_v9 = vadd.f32 %v3282_v4, %v3281_v22 }
 0x411   :  { %v2663_v48 = vadd.f32 %v3283_v9, %v2614_v24 }
 0x462   :  { %v3328_v57 = vpop.f32.mrb[88].mxu1 }
 0x463   :  { %v3329_v12 = vpop.f32.mrb[89].mxu1 }
 0x464   :  { %v3330_v52 = vadd.f32 %v3329_v12, %v3328_v57  ;;  %v3331_v62 = vpop.f32.mrb[90].mxu1 }
 0x465   :  { %v3332_v13 = vpop.f32.mrb[91].mxu1 }
 0x466   :  { %v3333_v19 = vadd.f32 %v3332_v13, %v3331_v62  ;;  %v3300_v23 = vpop.f32.mrb[56].mxu0 }
 0x467   :  { %v3301_v7 = vpop.f32.mrb[57].mxu0 }
 0x468   :  { %v3302_v38 = vadd.f32 %v3301_v7, %v3300_v23  ;;  %v3303_v14 = vpop.f32.mrb[58].mxu0 }
 0x469   :  { %v3304_v6 = vpop.f32.mrb[59].mxu0 }
 0x46a   :  { %v2701_v55 = vadd.f32 %v3302_v38, %v2652_v2  ;;  %v3305_v21 = vadd.f32 %v3304_v6, %v3303_v14 }
 0x46c   :  { %v2704_v49 = vadd.f32 %v3305_v21, %v2655_v54  ;;  %v2750_v26 = vadd.f32 %v3330_v52, %v2701_v55 }
 0x46e   :  { %v3306_v1 = vpop.f32.mrb[60].mxu0  ;;  %v2753_v18 = vadd.f32 %v3333_v19, %v2704_v49 }
 0x46f   :  { %v3307_v53 = vpop.f32.mrb[61].mxu0 }
 0x470   :  { %v3308_v60 = vadd.f32 %v3307_v53, %v3306_v1  ;;  %v3309_v8 = vpop.f32.mrb[62].mxu0  ;;  %v3334_v27 = vpop.f32.mrb[92].mxu1 }
 0x471   :  { %v3310_v43 = vpop.f32.mrb[63].mxu0  ;;  %v3335_v15 = vpop.f32.mrb[93].mxu1 }
 0x472   :  { %v2709_v3 = vadd.f32 %v3308_v60, %v2660_v10  ;;  %v3311_v0 = vadd.f32 %v3310_v43, %v3309_v8  ;;  %v3336_v29 = vadd.f32 %v3335_v15, %v3334_v27  ;;  %v3337_v44 = vpop.f32.mrb[94].mxu1 }
 0x473   :  { %v3338_v41 = vpop.f32.mrb[95].mxu1 }
 0x474   :  { %v2712_v34 = vadd.f32 %v3311_v0, %v2663_v48  ;;  %v2758_v16 = vadd.f32 %v3336_v29, %v2709_v3  ;;  %v3339_v5 = vadd.f32 %v3338_v41, %v3337_v44 }
 0x476   :  { %v2761_v45 = vadd.f32 %v3339_v5, %v2712_v34 }
 0x486   :  { %v3356_v50 = vpop.f32.mrb[64].mxu0 }
 0x487   :  { %v3357_v30 = vpop.f32.mrb[65].mxu0 }
 0x488   :  { %v3358_v46 = vadd.f32 %v3357_v30, %v3356_v50  ;;  %v3359_v63 = vpop.f32.mrb[66].mxu0 }
 0x489   :  { %v3360_v28 = vpop.f32.mrb[67].mxu0 }
 0x48a   :  { %v3361_v35 = vadd.f32 %v3360_v28, %v3359_v63  ;;  %v2799_v42 = vadd.f32 %v3358_v46, %v2750_v26 }
 0x48c   :  { %v2802_v36 = vadd.f32 %v3361_v35, %v2753_v18 }
 0x48e   :  { %v3362_v31 = vpop.f32.mrb[68].mxu0 }
 0x48f   :  { %v3363_v51 = vpop.f32.mrb[69].mxu0 }
 0x490   :  { %v3364_v37 = vadd.f32 %v3363_v51, %v3362_v31  ;;  %v3365_v58 = vpop.f32.mrb[70].mxu0 }
 0x491   :  { %v3366_v40 = vpop.f32.mrb[71].mxu0 }
 0x492   :  { %v3367_v25 = vadd.f32 %v3366_v40, %v3365_v58  ;;  %v2807_v20 = vadd.f32 %v3364_v37, %v2758_v16 }
 0x494   :  { %v2810_v24 = vadd.f32 %v3367_v25, %v2761_v45 }
 0x49a   :  { %v2847_v11 = vpop.f32.mrb[96].mxu1 }
 0x49b   :  { %v2848_v17 = vadd.f32 %v2847_v11, %v2799_v42  ;;  %v2849_v61 = vpop.f32.mrb[97].mxu1 }
 0x49c   :  { %v2850_v59 = vpop.f32.mrb[98].mxu1 }
 0x49d   :  { %v2851_v47 = vadd.f32 %v2850_v59, %v2802_v36  ;;  %v2852_v2 = vpop.f32.mrb[99].mxu1  ;;  %v2862_v56 = vmax.f32 %v2848_v17, 0.0 }
 0x49f   :  { %v2863_v9 = vmax.f32 %v2851_v47, 0.0 }
 0x4a2   :  { %v2855_v39 = vpop.f32.mrb[100].mxu1 }
 0x4a3   :  { %v2856_v54 = vadd.f32 %v2855_v39, %v2807_v20  ;;  %v2857_v33 = vpop.f32.mrb[101].mxu1 }
 0x4a4   :  { %v2858_v32 = vpop.f32.mrb[102].mxu1 }
 0x4a5   :  { %v2864_v22 = vmax.f32 %v2856_v54, 0.0  ;;  %v2859_v4 = vadd.f32 %v2858_v32, %v2810_v24  ;;  %v2860_v10 = vpop.f32.mrb[103].mxu1 }
 0x4a7   :  { %v2866_v48 = vmax.f32 %v2862_v56, %v2864_v22  ;;  %v2865_v57 = vmax.f32 %v2859_v4, 0.0 }
 0x4a9   :  { %v2867_v12 = vmax.f32 %v2863_v9, %v2865_v57  ;;  %2870 = vrot.lane.b32.xlu0 %v2866_v48, %s3758_s19 }
 0x4ab   :  { %2872 = vrot.lane.b32.xlu1 %v2867_v12, %s3758_s19 }
 0x51b   :  { %v2871_v52 = vpop.permute.xlu0 %2870 }
 0x51c   :  { %v2876_v62 = vmax.f32 %v2866_v48, %v2871_v52 }
 0x51d   :  { %v2873_v13 = vpop.permute.xlu1 %2872 }
 0x51e   :  { %2878 = vst.msk [vmem:[%s4909_s3] sm:$0xff] %vm1599_vm2, %v2876_v62  ;;  %v2877_v19 = vmax.f32 %v2867_v12, %v2873_v13 }
 0x520   :  { %2879 = vst.msk [vmem:[%s4909_s3 + $0x8] sm:$0xff] %vm1599_vm2, %v2877_v19 }

</bundles_post_ra>
